<compile_context>
chip_gen: v5e
topology: v5e:2x2
jax: 0.10.0
libtpu: 0.0.40
codegen_flags: <defaults>
</compile_context>

<pallas_src>
import functools

import jax
import jax.numpy as jnp
from jax.experimental import pallas as pl
from jax.experimental.pallas import tpu as pltpu

# ----- small, forward-consistent sizes -----
B = 2             # batch
CIN = 1           # input channels (raw 1-d signal)
T = 128           # input length
KERNEL = 8        # encoder conv kernel
STRIDE = 8        # encoder conv stride (== kernel -> non-overlapping patches)
CENC = 32         # encoder output channels (z dim)
H = 32            # GRU hidden size (context dim)
NUM_CLASSES = 10
TP = T // STRIDE  # encoded sequence length

LANES = 128       # lane width of both packed slabs and the output block
BPAD = 8          # batch rows padded to one f32 sublane tile
RB = 16           # bf16 sublane tile -> row alignment of weight-slab blocks

# weight slab row layout (each block starts on a 16-row bf16 tile boundary)
R_ENC = 0                 # w_enc  [CIN*KERNEL, CENC]   rows [0, 8)
R_I3 = RB                 # w_i3   [CENC, 3H]           rows [16, 48)
R_H3 = R_I3 + CENC        # w_h3   [H, 3H]              rows [48, 80)
R_CLS = R_H3 + H          # w_cls  [H, 128]             rows [80, 112)
R_TOT = R_CLS + H         # 112 rows total


# ---------------- fused Pallas kernel ----------------

def _fused_cpc_kernel(patch_ref, w_ref, b_ref, logits_ref, *, n_steps):
    """Encoder (patch matmul + ReLU) -> GRU over time -> Linear classifier.

    patch_ref : [n_steps*BPAD, CIN*KERNEL] bf16, time-major rows t*BPAD + b
    w_ref     : [R_TOT, 128] bf16 packed weight slab
    b_ref     : [BPAD, 128] f32 packed bias slab
                  row 0: b_enc                      (cols 0:CENC)
                  row 1: b_i3 + [b_hr, b_hz, 0]     (cols 0:3H)
                  row 2: [0, 0, b_hn]               (cols 0:3H)
                  row 3: b_cls                      (cols 0:NUM_CLASSES)
    logits_ref: [BPAD, 128] f32 (lane-dense; sliced to [B, NUM_CLASSES] outside)
    """
    h3 = 3 * H

    # ---- static weight views (bf16), each read exactly once ----
    w_enc = w_ref[R_ENC:R_ENC + CIN * KERNEL, 0:CENC]     # [8, CENC]
    w_i3 = w_ref[R_I3:R_I3 + CENC, 0:h3]                  # [CENC, 3H]
    w_h3 = w_ref[R_H3:R_H3 + H, 0:h3]                     # [H, 3H]
    w_cls = w_ref[R_CLS:R_CLS + H, :]                     # [H, 128]

    # ---- bias rows (f32) ----
    b_enc = b_ref[0:1, 0:CENC]                            # [1, CENC]
    b_g = b_ref[1:2, 0:h3]                                # [1, 3H]
    b_hn = b_ref[2:3, 0:h3]                               # [1, 3H] (zeros on r/u lanes)
    b_cls = b_ref[3:4, :]                                 # [1, 128]

    # ---- encoder: strided Conv1d + ReLU as one patch matmul (time-major) ----
    z = jnp.maximum(
        jnp.dot(patch_ref[...], w_enc, preferred_element_type=jnp.float32)
        + b_enc,
        0.0)                                              # [TP*BPAD, CENC] f32

    # ---- hoisted input projections for ALL steps (input + r/u hidden biases
    #      folded into b_g) ----
    g = jnp.dot(z.astype(jnp.bfloat16), w_i3,
                preferred_element_type=jnp.float32) + b_g  # [TP*BPAD, 3H] f32

    # pre-broadcast the only remaining per-step bias once (no per-step
    # broadcast_in_dim); zeros on the r/u lanes so the add is lane-aligned.
    bh = jnp.broadcast_to(b_hn, (BPAD, h3))                # [BPAD, 3H]

    # ---- GRU recurrence, fully unrolled (n_steps small & static) ----
    h = jnp.zeros((BPAD, H), jnp.float32)
    for t in range(n_steps):
        g_t = g[t * BPAD:(t + 1) * BPAD, :]                # [BPAD, 3H], 8-row aligned
        hh = jnp.dot(h.astype(jnp.bfloat16), w_h3,
                     preferred_element_type=jnp.float32) + bh
        # r and u with a single sigmoid over the fused [BPAD, 2H] slab
        ru = jax.nn.sigmoid(g_t[:, :2 * H] + hh[:, :2 * H])
        r = ru[:, :H]
        u = ru[:, H:]
        n = jnp.tanh(g_t[:, 2 * H:] + r * hh[:, 2 * H:])
        h = (1.0 - u) * n + u * h

    # ---- classifier on final context c = h : lane-dense [BPAD, 128] store ----
    logits_ref[...] = (jnp.dot(h.astype(jnp.bfloat16), w_cls,
                               preferred_element_type=jnp.float32) + b_cls)


# ---------------- wrapper ----------------

@jax.jit
def cpc_with_classifier_forward(x, packed):
    """x: [B, CIN, T] float32 -> logits [B, NUM_CLASSES]."""
    bx, ci, tx = x.shape
    assert bx <= BPAD
    tp = tx // STRIDE

    # non-overlapping conv patches, (t, b)-major; batch padded to 8 sublanes
    # (flattened in (cin, k) order to match PyTorch Conv1d weight [Cout,Cin,K])
    patches = (x.reshape(bx, ci, tp, KERNEL)
                 .transpose(2, 0, 1, 3)                 # [tp, bx, ci, K]
                 .reshape(tp, bx, ci * KERNEL))
    patches = jnp.pad(patches, ((0, 0), (0, BPAD - bx), (0, 0)))
    patches = patches.reshape(tp * BPAD, ci * KERNEL).astype(jnp.bfloat16)

    kernel = functools.partial(_fused_cpc_kernel, n_steps=tp)
    vmem = pl.BlockSpec(memory_space=pltpu.MemorySpace.VMEM)

    logits_pad = pl.pallas_call(
        kernel,
        out_shape=jax.ShapeDtypeStruct((BPAD, LANES), jnp.float32),
        in_specs=[vmem, vmem, vmem],
        out_specs=vmem,
    )(patches, packed["w_slab"], packed["b_slab"])

    return logits_pad[:bx, :NUM_CLASSES]


# ---------------- parameter packing (wrapper-side, done once) ----------------

def pack_params(p):
    h3 = 3 * H
    w_i3 = jnp.concatenate([p["w_ir"], p["w_iz"], p["w_in"]], axis=1)   # [CENC,3H]
    w_h3 = jnp.concatenate([p["w_hr"], p["w_hz"], p["w_hn"]], axis=1)   # [H,3H]

    # bf16 weight slab [R_TOT, 128]
    w = jnp.zeros((R_TOT, LANES), jnp.float32)
    w = w.at[R_ENC:R_ENC + CIN * KERNEL, :CENC].set(p["w_enc"])
    w = w.at[R_I3:R_I3 + CENC, :h3].set(w_i3)
    w = w.at[R_H3:R_H3 + H, :h3].set(w_h3)
    w = w.at[R_CLS:R_CLS + H, :NUM_CLASSES].set(p["w_cls"])
    w = w.astype(jnp.bfloat16)

    # f32 bias slab [BPAD, 128]
    b_g = (jnp.concatenate([p["b_ir"], p["b_iz"], p["b_in"]])
           + jnp.concatenate([p["b_hr"], p["b_hz"],
                              jnp.zeros((H,), jnp.float32)]))
    b = jnp.zeros((BPAD, LANES), jnp.float32)
    b = b.at[0, :CENC].set(p["b_enc"])
    b = b.at[1, :h3].set(b_g)
    b = b.at[2, 2 * H:h3].set(p["b_hn"])
    b = b.at[3, :NUM_CLASSES].set(p["b_cls"])

    return {"w_slab": w, "b_slab": b}


# ---------------- pure-JAX f32 reference (canonical GRU equations) ----------

def reference_forward(x, p):
    bx, ci, tx = x.shape
    tp = tx // STRIDE
    patches = (x.reshape(bx, ci, tp, KERNEL)
                 .transpose(0, 2, 1, 3)
                 .reshape(bx * tp, ci * KERNEL))
    z = jnp.maximum(patches @ p["w_enc"] + p["b_enc"], 0.0).reshape(bx, tp, CENC)

    h = jnp.zeros((bx, H), jnp.float32)
    for t in range(tp):
        x_t = z[:, t, :]
        r = jax.nn.sigmoid(x_t @ p["w_ir"] + p["b_ir"] + h @ p["w_hr"] + p["b_hr"])
        u = jax.nn.sigmoid(x_t @ p["w_iz"] + p["b_iz"] + h @ p["w_hz"] + p["b_hz"])
        n = jnp.tanh(x_t @ p["w_in"] + p["b_in"] + r * (h @ p["w_hn"] + p["b_hn"]))
        h = (1.0 - u) * n + u * h
    return h @ p["w_cls"] + p["b_cls"]


# ---------------- deterministic parameter init ----------------

def make_params(key):
    ks = jax.random.split(key, 16)
    s = 0.1

    def nrm(k, shape):
        return (s * jax.random.normal(k, shape)).astype(jnp.float32)

    return {
        "w_enc": nrm(ks[0], (CIN * KERNEL, CENC)),
        "b_enc": nrm(ks[1], (CENC,)),
        "w_ir": nrm(ks[2], (CENC, H)), "w_iz": nrm(ks[3], (CENC, H)),
        "w_in": nrm(ks[4], (CENC, H)),
        "w_hr": nrm(ks[5], (H, H)), "w_hz": nrm(ks[6], (H, H)),
        "w_hn": nrm(ks[7], (H, H)),
        "b_ir": nrm(ks[8], (H,)), "b_iz": nrm(ks[9], (H,)),
        "b_in": nrm(ks[10], (H,)),
        "b_hr": nrm(ks[11], (H,)), "b_hz": nrm(ks[12], (H,)),
        "b_hn": nrm(ks[13], (H,)),
        "w_cls": nrm(ks[14], (H, NUM_CLASSES)),
        "b_cls": nrm(ks[15], (NUM_CLASSES,)),
    }


if __name__ == "__main__":
    root = jax.random.PRNGKey(0)
    kx, kp = jax.random.split(root)
    x = jax.random.normal(kx, (B, CIN, T), dtype=jnp.float32)
    params = make_params(kp)
    packed = pack_params(params)

    logits = jax.block_until_ready(cpc_with_classifier_forward(x, packed))
    ref = jax.block_until_ready(reference_forward(x, params))

    assert logits.shape == (B, NUM_CLASSES)
    # bf16 MXU operands (per perf feedback) -> relaxed tolerance vs f32 reference
    assert jnp.allclose(logits, ref, atol=2e-2, rtol=2e-2), (
        float(jnp.max(jnp.abs(logits - ref))))

    print("KERNEL_OK")
</pallas_src>

<mosaic_0001>
module attributes {stable_mosaic.version = 11 : i64} {
  func.func @_fused_cpc_kernel(%arg0: memref<128x8xbf16, #tpu.memory_space<vmem>>, %arg1: memref<112x128xbf16, #tpu.memory_space<vmem>>, %arg2: memref<8x128xf32, #tpu.memory_space<vmem>>, %arg3: memref<8x128xf32, #tpu.memory_space<vmem>>) attributes {dimension_semantics = [], scalar_prefetch = 0 : i64, scratch_operands = 0 : i64, tpu.core_type = #tpu.core_type<tc>} {
    %c0 = arith.constant 0 : index
    %c0_0 = arith.constant 0 : index
    %0 = vector.load %arg1[%c0, %c0_0] : memref<112x128xbf16, #tpu.memory_space<vmem>>, vector<8x32xbf16>
    %c16 = arith.constant 16 : index
    %c0_1 = arith.constant 0 : index
    %1 = vector.load %arg1[%c16, %c0_1] : memref<112x128xbf16, #tpu.memory_space<vmem>>, vector<32x96xbf16>
    %c48 = arith.constant 48 : index
    %c0_2 = arith.constant 0 : index
    %2 = vector.load %arg1[%c48, %c0_2] : memref<112x128xbf16, #tpu.memory_space<vmem>>, vector<32x96xbf16>
    %c80 = arith.constant 80 : index
    %c0_3 = arith.constant 0 : index
    %3 = vector.load %arg1[%c80, %c0_3] : memref<112x128xbf16, #tpu.memory_space<vmem>>, vector<32x128xbf16>
    %c0_4 = arith.constant 0 : index
    %c0_5 = arith.constant 0 : index
    %4 = vector.load %arg2[%c0_4, %c0_5] : memref<8x128xf32, #tpu.memory_space<vmem>>, vector<1x32xf32>
    %c1 = arith.constant 1 : index
    %c0_6 = arith.constant 0 : index
    %5 = vector.load %arg2[%c1, %c0_6] : memref<8x128xf32, #tpu.memory_space<vmem>>, vector<1x96xf32>
    %c2 = arith.constant 2 : index
    %c0_7 = arith.constant 0 : index
    %6 = vector.load %arg2[%c2, %c0_7] : memref<8x128xf32, #tpu.memory_space<vmem>>, vector<1x96xf32>
    %c3 = arith.constant 3 : index
    %c0_8 = arith.constant 0 : index
    %7 = vector.load %arg2[%c3, %c0_8] : memref<8x128xf32, #tpu.memory_space<vmem>>, vector<1x128xf32>
    %c0_9 = arith.constant 0 : index
    %c0_10 = arith.constant 0 : index
    %8 = vector.load %arg0[%c0_9, %c0_10] : memref<128x8xbf16, #tpu.memory_space<vmem>>, vector<128x8xbf16>
    %cst = arith.constant dense<0.000000e+00> : vector<128x32xf32>
    %9 = tpu.matmul %8, %0, %cst {dimension_numbers = #tpu.dot_dimension_numbers<[1], [0], [0], [1], [0, 0, 1, 1], [], []>} : vector<128x8xbf16>, vector<8x32xbf16>, vector<128x32xf32> -> vector<128x32xf32>
    %10 = vector.broadcast %4 : vector<1x32xf32> to vector<128x32xf32>
    %11 = arith.addf %9, %10 : vector<128x32xf32>
    %cst_11 = arith.constant 0.000000e+00 : f32
    %12 = vector.broadcast %cst_11 : f32 to vector<128x32xf32>
    %13 = arith.maximumf %11, %12 : vector<128x32xf32>
    %14 = arith.truncf %13 : vector<128x32xf32> to vector<128x32xbf16>
    %cst_12 = arith.constant dense<0.000000e+00> : vector<128x96xf32>
    %15 = tpu.matmul %14, %1, %cst_12 {dimension_numbers = #tpu.dot_dimension_numbers<[1], [0], [0], [1], [0, 0, 1, 1], [], []>} : vector<128x32xbf16>, vector<32x96xbf16>, vector<128x96xf32> -> vector<128x96xf32>
    %16 = vector.broadcast %5 : vector<1x96xf32> to vector<128x96xf32>
    %17 = arith.addf %15, %16 : vector<128x96xf32>
    %18 = vector.shape_cast %6 : vector<1x96xf32> to vector<1x96xf32>
    %19 = vector.broadcast %18 : vector<1x96xf32> to vector<8x96xf32>
    %cst_13 = arith.constant 0.000000e+00 : f32
    %20 = vector.broadcast %cst_13 : f32 to vector<8x32xf32>
    %21 = vector.extract_strided_slice %17 {offsets = [0, 0], sizes = [8, 96], strides = [1, 1]} : vector<128x96xf32> to vector<8x96xf32>
    %22 = arith.truncf %20 : vector<8x32xf32> to vector<8x32xbf16>
    %cst_14 = arith.constant dense<0.000000e+00> : vector<8x96xf32>
    %23 = tpu.matmul %22, %2, %cst_14 {dimension_numbers = #tpu.dot_dimension_numbers<[1], [0], [0], [1], [0, 0, 1, 1], [], []>} : vector<8x32xbf16>, vector<32x96xbf16>, vector<8x96xf32> -> vector<8x96xf32>
    %24 = arith.addf %23, %19 : vector<8x96xf32>
    %25 = vector.extract_strided_slice %21 {offsets = [0, 0], sizes = [8, 64], strides = [1, 1]} : vector<8x96xf32> to vector<8x64xf32>
    %26 = vector.extract_strided_slice %24 {offsets = [0, 0], sizes = [8, 64], strides = [1, 1]} : vector<8x96xf32> to vector<8x64xf32>
    %27 = arith.addf %25, %26 : vector<8x64xf32>
    %28 = arith.negf %27 : vector<8x64xf32>
    %29 = math.exp %28 : vector<8x64xf32>
    %cst_15 = arith.constant 1.000000e+00 : f32
    %30 = vector.broadcast %cst_15 : f32 to vector<8x64xf32>
    %31 = arith.addf %30, %29 : vector<8x64xf32>
    %32 = arith.divf %30, %31 : vector<8x64xf32>
    %33 = vector.extract_strided_slice %32 {offsets = [0, 0], sizes = [8, 32], strides = [1, 1]} : vector<8x64xf32> to vector<8x32xf32>
    %34 = vector.extract_strided_slice %32 {offsets = [0, 32], sizes = [8, 32], strides = [1, 1]} : vector<8x64xf32> to vector<8x32xf32>
    %35 = vector.extract_strided_slice %21 {offsets = [0, 64], sizes = [8, 32], strides = [1, 1]} : vector<8x96xf32> to vector<8x32xf32>
    %36 = vector.extract_strided_slice %24 {offsets = [0, 64], sizes = [8, 32], strides = [1, 1]} : vector<8x96xf32> to vector<8x32xf32>
    %37 = arith.mulf %33, %36 : vector<8x32xf32>
    %38 = arith.addf %35, %37 : vector<8x32xf32>
    %39 = math.tanh %38 : vector<8x32xf32>
    %cst_16 = arith.constant 1.000000e+00 : f32
    %40 = vector.broadcast %cst_16 : f32 to vector<8x32xf32>
    %41 = arith.subf %40, %34 : vector<8x32xf32>
    %42 = arith.mulf %41, %39 : vector<8x32xf32>
    %43 = arith.mulf %34, %20 : vector<8x32xf32>
    %44 = arith.addf %42, %43 : vector<8x32xf32>
    %45 = vector.extract_strided_slice %17 {offsets = [8, 0], sizes = [8, 96], strides = [1, 1]} : vector<128x96xf32> to vector<8x96xf32>
    %46 = arith.truncf %44 : vector<8x32xf32> to vector<8x32xbf16>
    %cst_17 = arith.constant dense<0.000000e+00> : vector<8x96xf32>
    %47 = tpu.matmul %46, %2, %cst_17 {dimension_numbers = #tpu.dot_dimension_numbers<[1], [0], [0], [1], [0, 0, 1, 1], [], []>} : vector<8x32xbf16>, vector<32x96xbf16>, vector<8x96xf32> -> vector<8x96xf32>
    %48 = arith.addf %47, %19 : vector<8x96xf32>
    %49 = vector.extract_strided_slice %45 {offsets = [0, 0], sizes = [8, 64], strides = [1, 1]} : vector<8x96xf32> to vector<8x64xf32>
    %50 = vector.extract_strided_slice %48 {offsets = [0, 0], sizes = [8, 64], strides = [1, 1]} : vector<8x96xf32> to vector<8x64xf32>
    %51 = arith.addf %49, %50 : vector<8x64xf32>
    %52 = arith.negf %51 : vector<8x64xf32>
    %53 = math.exp %52 : vector<8x64xf32>
    %cst_18 = arith.constant 1.000000e+00 : f32
    %54 = vector.broadcast %cst_18 : f32 to vector<8x64xf32>
    %55 = arith.addf %54, %53 : vector<8x64xf32>
    %56 = arith.divf %54, %55 : vector<8x64xf32>
    %57 = vector.extract_strided_slice %56 {offsets = [0, 0], sizes = [8, 32], strides = [1, 1]} : vector<8x64xf32> to vector<8x32xf32>
    %58 = vector.extract_strided_slice %56 {offsets = [0, 32], sizes = [8, 32], strides = [1, 1]} : vector<8x64xf32> to vector<8x32xf32>
    %59 = vector.extract_strided_slice %45 {offsets = [0, 64], sizes = [8, 32], strides = [1, 1]} : vector<8x96xf32> to vector<8x32xf32>
    %60 = vector.extract_strided_slice %48 {offsets = [0, 64], sizes = [8, 32], strides = [1, 1]} : vector<8x96xf32> to vector<8x32xf32>
    %61 = arith.mulf %57, %60 : vector<8x32xf32>
    %62 = arith.addf %59, %61 : vector<8x32xf32>
    %63 = math.tanh %62 : vector<8x32xf32>
    %cst_19 = arith.constant 1.000000e+00 : f32
    %64 = vector.broadcast %cst_19 : f32 to vector<8x32xf32>
    %65 = arith.subf %64, %58 : vector<8x32xf32>
    %66 = arith.mulf %65, %63 : vector<8x32xf32>
    %67 = arith.mulf %58, %44 : vector<8x32xf32>
    %68 = arith.addf %66, %67 : vector<8x32xf32>
    %69 = vector.extract_strided_slice %17 {offsets = [16, 0], sizes = [8, 96], strides = [1, 1]} : vector<128x96xf32> to vector<8x96xf32>
    %70 = arith.truncf %68 : vector<8x32xf32> to vector<8x32xbf16>
    %cst_20 = arith.constant dense<0.000000e+00> : vector<8x96xf32>
    %71 = tpu.matmul %70, %2, %cst_20 {dimension_numbers = #tpu.dot_dimension_numbers<[1], [0], [0], [1], [0, 0, 1, 1], [], []>} : vector<8x32xbf16>, vector<32x96xbf16>, vector<8x96xf32> -> vector<8x96xf32>
    %72 = arith.addf %71, %19 : vector<8x96xf32>
    %73 = vector.extract_strided_slice %69 {offsets = [0, 0], sizes = [8, 64], strides = [1, 1]} : vector<8x96xf32> to vector<8x64xf32>
    %74 = vector.extract_strided_slice %72 {offsets = [0, 0], sizes = [8, 64], strides = [1, 1]} : vector<8x96xf32> to vector<8x64xf32>
    %75 = arith.addf %73, %74 : vector<8x64xf32>
    %76 = arith.negf %75 : vector<8x64xf32>
    %77 = math.exp %76 : vector<8x64xf32>
    %cst_21 = arith.constant 1.000000e+00 : f32
    %78 = vector.broadcast %cst_21 : f32 to vector<8x64xf32>
    %79 = arith.addf %78, %77 : vector<8x64xf32>
    %80 = arith.divf %78, %79 : vector<8x64xf32>
    %81 = vector.extract_strided_slice %80 {offsets = [0, 0], sizes = [8, 32], strides = [1, 1]} : vector<8x64xf32> to vector<8x32xf32>
    %82 = vector.extract_strided_slice %80 {offsets = [0, 32], sizes = [8, 32], strides = [1, 1]} : vector<8x64xf32> to vector<8x32xf32>
    %83 = vector.extract_strided_slice %69 {offsets = [0, 64], sizes = [8, 32], strides = [1, 1]} : vector<8x96xf32> to vector<8x32xf32>
    %84 = vector.extract_strided_slice %72 {offsets = [0, 64], sizes = [8, 32], strides = [1, 1]} : vector<8x96xf32> to vector<8x32xf32>
    %85 = arith.mulf %81, %84 : vector<8x32xf32>
    %86 = arith.addf %83, %85 : vector<8x32xf32>
    %87 = math.tanh %86 : vector<8x32xf32>
    %cst_22 = arith.constant 1.000000e+00 : f32
    %88 = vector.broadcast %cst_22 : f32 to vector<8x32xf32>
    %89 = arith.subf %88, %82 : vector<8x32xf32>
    %90 = arith.mulf %89, %87 : vector<8x32xf32>
    %91 = arith.mulf %82, %68 : vector<8x32xf32>
    %92 = arith.addf %90, %91 : vector<8x32xf32>
    %93 = vector.extract_strided_slice %17 {offsets = [24, 0], sizes = [8, 96], strides = [1, 1]} : vector<128x96xf32> to vector<8x96xf32>
    %94 = arith.truncf %92 : vector<8x32xf32> to vector<8x32xbf16>
    %cst_23 = arith.constant dense<0.000000e+00> : vector<8x96xf32>
    %95 = tpu.matmul %94, %2, %cst_23 {dimension_numbers = #tpu.dot_dimension_numbers<[1], [0], [0], [1], [0, 0, 1, 1], [], []>} : vector<8x32xbf16>, vector<32x96xbf16>, vector<8x96xf32> -> vector<8x96xf32>
    %96 = arith.addf %95, %19 : vector<8x96xf32>
    %97 = vector.extract_strided_slice %93 {offsets = [0, 0], sizes = [8, 64], strides = [1, 1]} : vector<8x96xf32> to vector<8x64xf32>
    %98 = vector.extract_strided_slice %96 {offsets = [0, 0], sizes = [8, 64], strides = [1, 1]} : vector<8x96xf32> to vector<8x64xf32>
    %99 = arith.addf %97, %98 : vector<8x64xf32>
    %100 = arith.negf %99 : vector<8x64xf32>
    %101 = math.exp %100 : vector<8x64xf32>
    %cst_24 = arith.constant 1.000000e+00 : f32
    %102 = vector.broadcast %cst_24 : f32 to vector<8x64xf32>
    %103 = arith.addf %102, %101 : vector<8x64xf32>
    %104 = arith.divf %102, %103 : vector<8x64xf32>
    %105 = vector.extract_strided_slice %104 {offsets = [0, 0], sizes = [8, 32], strides = [1, 1]} : vector<8x64xf32> to vector<8x32xf32>
    %106 = vector.extract_strided_slice %104 {offsets = [0, 32], sizes = [8, 32], strides = [1, 1]} : vector<8x64xf32> to vector<8x32xf32>
    %107 = vector.extract_strided_slice %93 {offsets = [0, 64], sizes = [8, 32], strides = [1, 1]} : vector<8x96xf32> to vector<8x32xf32>
    %108 = vector.extract_strided_slice %96 {offsets = [0, 64], sizes = [8, 32], strides = [1, 1]} : vector<8x96xf32> to vector<8x32xf32>
    %109 = arith.mulf %105, %108 : vector<8x32xf32>
    %110 = arith.addf %107, %109 : vector<8x32xf32>
    %111 = math.tanh %110 : vector<8x32xf32>
    %cst_25 = arith.constant 1.000000e+00 : f32
    %112 = vector.broadcast %cst_25 : f32 to vector<8x32xf32>
    %113 = arith.subf %112, %106 : vector<8x32xf32>
    %114 = arith.mulf %113, %111 : vector<8x32xf32>
    %115 = arith.mulf %106, %92 : vector<8x32xf32>
    %116 = arith.addf %114, %115 : vector<8x32xf32>
    %117 = vector.extract_strided_slice %17 {offsets = [32, 0], sizes = [8, 96], strides = [1, 1]} : vector<128x96xf32> to vector<8x96xf32>
    %118 = arith.truncf %116 : vector<8x32xf32> to vector<8x32xbf16>
    %cst_26 = arith.constant dense<0.000000e+00> : vector<8x96xf32>
    %119 = tpu.matmul %118, %2, %cst_26 {dimension_numbers = #tpu.dot_dimension_numbers<[1], [0], [0], [1], [0, 0, 1, 1], [], []>} : vector<8x32xbf16>, vector<32x96xbf16>, vector<8x96xf32> -> vector<8x96xf32>
    %120 = arith.addf %119, %19 : vector<8x96xf32>
    %121 = vector.extract_strided_slice %117 {offsets = [0, 0], sizes = [8, 64], strides = [1, 1]} : vector<8x96xf32> to vector<8x64xf32>
    %122 = vector.extract_strided_slice %120 {offsets = [0, 0], sizes = [8, 64], strides = [1, 1]} : vector<8x96xf32> to vector<8x64xf32>
    %123 = arith.addf %121, %122 : vector<8x64xf32>
    %124 = arith.negf %123 : vector<8x64xf32>
    %125 = math.exp %124 : vector<8x64xf32>
    %cst_27 = arith.constant 1.000000e+00 : f32
    %126 = vector.broadcast %cst_27 : f32 to vector<8x64xf32>
    %127 = arith.addf %126, %125 : vector<8x64xf32>
    %128 = arith.divf %126, %127 : vector<8x64xf32>
    %129 = vector.extract_strided_slice %128 {offsets = [0, 0], sizes = [8, 32], strides = [1, 1]} : vector<8x64xf32> to vector<8x32xf32>
    %130 = vector.extract_strided_slice %128 {offsets = [0, 32], sizes = [8, 32], strides = [1, 1]} : vector<8x64xf32> to vector<8x32xf32>
    %131 = vector.extract_strided_slice %117 {offsets = [0, 64], sizes = [8, 32], strides = [1, 1]} : vector<8x96xf32> to vector<8x32xf32>
    %132 = vector.extract_strided_slice %120 {offsets = [0, 64], sizes = [8, 32], strides = [1, 1]} : vector<8x96xf32> to vector<8x32xf32>
    %133 = arith.mulf %129, %132 : vector<8x32xf32>
    %134 = arith.addf %131, %133 : vector<8x32xf32>
    %135 = math.tanh %134 : vector<8x32xf32>
    %cst_28 = arith.constant 1.000000e+00 : f32
    %136 = vector.broadcast %cst_28 : f32 to vector<8x32xf32>
    %137 = arith.subf %136, %130 : vector<8x32xf32>
    %138 = arith.mulf %137, %135 : vector<8x32xf32>
    %139 = arith.mulf %130, %116 : vector<8x32xf32>
    %140 = arith.addf %138, %139 : vector<8x32xf32>
    %141 = vector.extract_strided_slice %17 {offsets = [40, 0], sizes = [8, 96], strides = [1, 1]} : vector<128x96xf32> to vector<8x96xf32>
    %142 = arith.truncf %140 : vector<8x32xf32> to vector<8x32xbf16>
    %cst_29 = arith.constant dense<0.000000e+00> : vector<8x96xf32>
    %143 = tpu.matmul %142, %2, %cst_29 {dimension_numbers = #tpu.dot_dimension_numbers<[1], [0], [0], [1], [0, 0, 1, 1], [], []>} : vector<8x32xbf16>, vector<32x96xbf16>, vector<8x96xf32> -> vector<8x96xf32>
    %144 = arith.addf %143, %19 : vector<8x96xf32>
    %145 = vector.extract_strided_slice %141 {offsets = [0, 0], sizes = [8, 64], strides = [1, 1]} : vector<8x96xf32> to vector<8x64xf32>
    %146 = vector.extract_strided_slice %144 {offsets = [0, 0], sizes = [8, 64], strides = [1, 1]} : vector<8x96xf32> to vector<8x64xf32>
    %147 = arith.addf %145, %146 : vector<8x64xf32>
    %148 = arith.negf %147 : vector<8x64xf32>
    %149 = math.exp %148 : vector<8x64xf32>
    %cst_30 = arith.constant 1.000000e+00 : f32
    %150 = vector.broadcast %cst_30 : f32 to vector<8x64xf32>
    %151 = arith.addf %150, %149 : vector<8x64xf32>
    %152 = arith.divf %150, %151 : vector<8x64xf32>
    %153 = vector.extract_strided_slice %152 {offsets = [0, 0], sizes = [8, 32], strides = [1, 1]} : vector<8x64xf32> to vector<8x32xf32>
    %154 = vector.extract_strided_slice %152 {offsets = [0, 32], sizes = [8, 32], strides = [1, 1]} : vector<8x64xf32> to vector<8x32xf32>
    %155 = vector.extract_strided_slice %141 {offsets = [0, 64], sizes = [8, 32], strides = [1, 1]} : vector<8x96xf32> to vector<8x32xf32>
    %156 = vector.extract_strided_slice %144 {offsets = [0, 64], sizes = [8, 32], strides = [1, 1]} : vector<8x96xf32> to vector<8x32xf32>
    %157 = arith.mulf %153, %156 : vector<8x32xf32>
    %158 = arith.addf %155, %157 : vector<8x32xf32>
    %159 = math.tanh %158 : vector<8x32xf32>
    %cst_31 = arith.constant 1.000000e+00 : f32
    %160 = vector.broadcast %cst_31 : f32 to vector<8x32xf32>
    %161 = arith.subf %160, %154 : vector<8x32xf32>
    %162 = arith.mulf %161, %159 : vector<8x32xf32>
    %163 = arith.mulf %154, %140 : vector<8x32xf32>
    %164 = arith.addf %162, %163 : vector<8x32xf32>
    %165 = vector.extract_strided_slice %17 {offsets = [48, 0], sizes = [8, 96], strides = [1, 1]} : vector<128x96xf32> to vector<8x96xf32>
    %166 = arith.truncf %164 : vector<8x32xf32> to vector<8x32xbf16>
    %cst_32 = arith.constant dense<0.000000e+00> : vector<8x96xf32>
    %167 = tpu.matmul %166, %2, %cst_32 {dimension_numbers = #tpu.dot_dimension_numbers<[1], [0], [0], [1], [0, 0, 1, 1], [], []>} : vector<8x32xbf16>, vector<32x96xbf16>, vector<8x96xf32> -> vector<8x96xf32>
    %168 = arith.addf %167, %19 : vector<8x96xf32>
    %169 = vector.extract_strided_slice %165 {offsets = [0, 0], sizes = [8, 64], strides = [1, 1]} : vector<8x96xf32> to vector<8x64xf32>
    %170 = vector.extract_strided_slice %168 {offsets = [0, 0], sizes = [8, 64], strides = [1, 1]} : vector<8x96xf32> to vector<8x64xf32>
    %171 = arith.addf %169, %170 : vector<8x64xf32>
    %172 = arith.negf %171 : vector<8x64xf32>
    %173 = math.exp %172 : vector<8x64xf32>
    %cst_33 = arith.constant 1.000000e+00 : f32
    %174 = vector.broadcast %cst_33 : f32 to vector<8x64xf32>
    %175 = arith.addf %174, %173 : vector<8x64xf32>
    %176 = arith.divf %174, %175 : vector<8x64xf32>
    %177 = vector.extract_strided_slice %176 {offsets = [0, 0], sizes = [8, 32], strides = [1, 1]} : vector<8x64xf32> to vector<8x32xf32>
    %178 = vector.extract_strided_slice %176 {offsets = [0, 32], sizes = [8, 32], strides = [1, 1]} : vector<8x64xf32> to vector<8x32xf32>
    %179 = vector.extract_strided_slice %165 {offsets = [0, 64], sizes = [8, 32], strides = [1, 1]} : vector<8x96xf32> to vector<8x32xf32>
    %180 = vector.extract_strided_slice %168 {offsets = [0, 64], sizes = [8, 32], strides = [1, 1]} : vector<8x96xf32> to vector<8x32xf32>
    %181 = arith.mulf %177, %180 : vector<8x32xf32>
    %182 = arith.addf %179, %181 : vector<8x32xf32>
    %183 = math.tanh %182 : vector<8x32xf32>
    %cst_34 = arith.constant 1.000000e+00 : f32
    %184 = vector.broadcast %cst_34 : f32 to vector<8x32xf32>
    %185 = arith.subf %184, %178 : vector<8x32xf32>
    %186 = arith.mulf %185, %183 : vector<8x32xf32>
    %187 = arith.mulf %178, %164 : vector<8x32xf32>
    %188 = arith.addf %186, %187 : vector<8x32xf32>
    %189 = vector.extract_strided_slice %17 {offsets = [56, 0], sizes = [8, 96], strides = [1, 1]} : vector<128x96xf32> to vector<8x96xf32>
    %190 = arith.truncf %188 : vector<8x32xf32> to vector<8x32xbf16>
    %cst_35 = arith.constant dense<0.000000e+00> : vector<8x96xf32>
    %191 = tpu.matmul %190, %2, %cst_35 {dimension_numbers = #tpu.dot_dimension_numbers<[1], [0], [0], [1], [0, 0, 1, 1], [], []>} : vector<8x32xbf16>, vector<32x96xbf16>, vector<8x96xf32> -> vector<8x96xf32>
    %192 = arith.addf %191, %19 : vector<8x96xf32>
    %193 = vector.extract_strided_slice %189 {offsets = [0, 0], sizes = [8, 64], strides = [1, 1]} : vector<8x96xf32> to vector<8x64xf32>
    %194 = vector.extract_strided_slice %192 {offsets = [0, 0], sizes = [8, 64], strides = [1, 1]} : vector<8x96xf32> to vector<8x64xf32>
    %195 = arith.addf %193, %194 : vector<8x64xf32>
    %196 = arith.negf %195 : vector<8x64xf32>
    %197 = math.exp %196 : vector<8x64xf32>
    %cst_36 = arith.constant 1.000000e+00 : f32
    %198 = vector.broadcast %cst_36 : f32 to vector<8x64xf32>
    %199 = arith.addf %198, %197 : vector<8x64xf32>
    %200 = arith.divf %198, %199 : vector<8x64xf32>
    %201 = vector.extract_strided_slice %200 {offsets = [0, 0], sizes = [8, 32], strides = [1, 1]} : vector<8x64xf32> to vector<8x32xf32>
    %202 = vector.extract_strided_slice %200 {offsets = [0, 32], sizes = [8, 32], strides = [1, 1]} : vector<8x64xf32> to vector<8x32xf32>
    %203 = vector.extract_strided_slice %189 {offsets = [0, 64], sizes = [8, 32], strides = [1, 1]} : vector<8x96xf32> to vector<8x32xf32>
    %204 = vector.extract_strided_slice %192 {offsets = [0, 64], sizes = [8, 32], strides = [1, 1]} : vector<8x96xf32> to vector<8x32xf32>
    %205 = arith.mulf %201, %204 : vector<8x32xf32>
    %206 = arith.addf %203, %205 : vector<8x32xf32>
    %207 = math.tanh %206 : vector<8x32xf32>
    %cst_37 = arith.constant 1.000000e+00 : f32
    %208 = vector.broadcast %cst_37 : f32 to vector<8x32xf32>
    %209 = arith.subf %208, %202 : vector<8x32xf32>
    %210 = arith.mulf %209, %207 : vector<8x32xf32>
    %211 = arith.mulf %202, %188 : vector<8x32xf32>
    %212 = arith.addf %210, %211 : vector<8x32xf32>
    %213 = vector.extract_strided_slice %17 {offsets = [64, 0], sizes = [8, 96], strides = [1, 1]} : vector<128x96xf32> to vector<8x96xf32>
    %214 = arith.truncf %212 : vector<8x32xf32> to vector<8x32xbf16>
    %cst_38 = arith.constant dense<0.000000e+00> : vector<8x96xf32>
    %215 = tpu.matmul %214, %2, %cst_38 {dimension_numbers = #tpu.dot_dimension_numbers<[1], [0], [0], [1], [0, 0, 1, 1], [], []>} : vector<8x32xbf16>, vector<32x96xbf16>, vector<8x96xf32> -> vector<8x96xf32>
    %216 = arith.addf %215, %19 : vector<8x96xf32>
    %217 = vector.extract_strided_slice %213 {offsets = [0, 0], sizes = [8, 64], strides = [1, 1]} : vector<8x96xf32> to vector<8x64xf32>
    %218 = vector.extract_strided_slice %216 {offsets = [0, 0], sizes = [8, 64], strides = [1, 1]} : vector<8x96xf32> to vector<8x64xf32>
    %219 = arith.addf %217, %218 : vector<8x64xf32>
    %220 = arith.negf %219 : vector<8x64xf32>
    %221 = math.exp %220 : vector<8x64xf32>
    %cst_39 = arith.constant 1.000000e+00 : f32
    %222 = vector.broadcast %cst_39 : f32 to vector<8x64xf32>
    %223 = arith.addf %222, %221 : vector<8x64xf32>
    %224 = arith.divf %222, %223 : vector<8x64xf32>
    %225 = vector.extract_strided_slice %224 {offsets = [0, 0], sizes = [8, 32], strides = [1, 1]} : vector<8x64xf32> to vector<8x32xf32>
    %226 = vector.extract_strided_slice %224 {offsets = [0, 32], sizes = [8, 32], strides = [1, 1]} : vector<8x64xf32> to vector<8x32xf32>
    %227 = vector.extract_strided_slice %213 {offsets = [0, 64], sizes = [8, 32], strides = [1, 1]} : vector<8x96xf32> to vector<8x32xf32>
    %228 = vector.extract_strided_slice %216 {offsets = [0, 64], sizes = [8, 32], strides = [1, 1]} : vector<8x96xf32> to vector<8x32xf32>
    %229 = arith.mulf %225, %228 : vector<8x32xf32>
    %230 = arith.addf %227, %229 : vector<8x32xf32>
    %231 = math.tanh %230 : vector<8x32xf32>
    %cst_40 = arith.constant 1.000000e+00 : f32
    %232 = vector.broadcast %cst_40 : f32 to vector<8x32xf32>
    %233 = arith.subf %232, %226 : vector<8x32xf32>
    %234 = arith.mulf %233, %231 : vector<8x32xf32>
    %235 = arith.mulf %226, %212 : vector<8x32xf32>
    %236 = arith.addf %234, %235 : vector<8x32xf32>
    %237 = vector.extract_strided_slice %17 {offsets = [72, 0], sizes = [8, 96], strides = [1, 1]} : vector<128x96xf32> to vector<8x96xf32>
    %238 = arith.truncf %236 : vector<8x32xf32> to vector<8x32xbf16>
    %cst_41 = arith.constant dense<0.000000e+00> : vector<8x96xf32>
    %239 = tpu.matmul %238, %2, %cst_41 {dimension_numbers = #tpu.dot_dimension_numbers<[1], [0], [0], [1], [0, 0, 1, 1], [], []>} : vector<8x32xbf16>, vector<32x96xbf16>, vector<8x96xf32> -> vector<8x96xf32>
    %240 = arith.addf %239, %19 : vector<8x96xf32>
    %241 = vector.extract_strided_slice %237 {offsets = [0, 0], sizes = [8, 64], strides = [1, 1]} : vector<8x96xf32> to vector<8x64xf32>
    %242 = vector.extract_strided_slice %240 {offsets = [0, 0], sizes = [8, 64], strides = [1, 1]} : vector<8x96xf32> to vector<8x64xf32>
    %243 = arith.addf %241, %242 : vector<8x64xf32>
    %244 = arith.negf %243 : vector<8x64xf32>
    %245 = math.exp %244 : vector<8x64xf32>
    %cst_42 = arith.constant 1.000000e+00 : f32
    %246 = vector.broadcast %cst_42 : f32 to vector<8x64xf32>
    %247 = arith.addf %246, %245 : vector<8x64xf32>
    %248 = arith.divf %246, %247 : vector<8x64xf32>
    %249 = vector.extract_strided_slice %248 {offsets = [0, 0], sizes = [8, 32], strides = [1, 1]} : vector<8x64xf32> to vector<8x32xf32>
    %250 = vector.extract_strided_slice %248 {offsets = [0, 32], sizes = [8, 32], strides = [1, 1]} : vector<8x64xf32> to vector<8x32xf32>
    %251 = vector.extract_strided_slice %237 {offsets = [0, 64], sizes = [8, 32], strides = [1, 1]} : vector<8x96xf32> to vector<8x32xf32>
    %252 = vector.extract_strided_slice %240 {offsets = [0, 64], sizes = [8, 32], strides = [1, 1]} : vector<8x96xf32> to vector<8x32xf32>
    %253 = arith.mulf %249, %252 : vector<8x32xf32>
    %254 = arith.addf %251, %253 : vector<8x32xf32>
    %255 = math.tanh %254 : vector<8x32xf32>
    %cst_43 = arith.constant 1.000000e+00 : f32
    %256 = vector.broadcast %cst_43 : f32 to vector<8x32xf32>
    %257 = arith.subf %256, %250 : vector<8x32xf32>
    %258 = arith.mulf %257, %255 : vector<8x32xf32>
    %259 = arith.mulf %250, %236 : vector<8x32xf32>
    %260 = arith.addf %258, %259 : vector<8x32xf32>
    %261 = vector.extract_strided_slice %17 {offsets = [80, 0], sizes = [8, 96], strides = [1, 1]} : vector<128x96xf32> to vector<8x96xf32>
    %262 = arith.truncf %260 : vector<8x32xf32> to vector<8x32xbf16>
    %cst_44 = arith.constant dense<0.000000e+00> : vector<8x96xf32>
    %263 = tpu.matmul %262, %2, %cst_44 {dimension_numbers = #tpu.dot_dimension_numbers<[1], [0], [0], [1], [0, 0, 1, 1], [], []>} : vector<8x32xbf16>, vector<32x96xbf16>, vector<8x96xf32> -> vector<8x96xf32>
    %264 = arith.addf %263, %19 : vector<8x96xf32>
    %265 = vector.extract_strided_slice %261 {offsets = [0, 0], sizes = [8, 64], strides = [1, 1]} : vector<8x96xf32> to vector<8x64xf32>
    %266 = vector.extract_strided_slice %264 {offsets = [0, 0], sizes = [8, 64], strides = [1, 1]} : vector<8x96xf32> to vector<8x64xf32>
    %267 = arith.addf %265, %266 : vector<8x64xf32>
    %268 = arith.negf %267 : vector<8x64xf32>
    %269 = math.exp %268 : vector<8x64xf32>
    %cst_45 = arith.constant 1.000000e+00 : f32
    %270 = vector.broadcast %cst_45 : f32 to vector<8x64xf32>
    %271 = arith.addf %270, %269 : vector<8x64xf32>
    %272 = arith.divf %270, %271 : vector<8x64xf32>
    %273 = vector.extract_strided_slice %272 {offsets = [0, 0], sizes = [8, 32], strides = [1, 1]} : vector<8x64xf32> to vector<8x32xf32>
    %274 = vector.extract_strided_slice %272 {offsets = [0, 32], sizes = [8, 32], strides = [1, 1]} : vector<8x64xf32> to vector<8x32xf32>
    %275 = vector.extract_strided_slice %261 {offsets = [0, 64], sizes = [8, 32], strides = [1, 1]} : vector<8x96xf32> to vector<8x32xf32>
    %276 = vector.extract_strided_slice %264 {offsets = [0, 64], sizes = [8, 32], strides = [1, 1]} : vector<8x96xf32> to vector<8x32xf32>
    %277 = arith.mulf %273, %276 : vector<8x32xf32>
    %278 = arith.addf %275, %277 : vector<8x32xf32>
    %279 = math.tanh %278 : vector<8x32xf32>
    %cst_46 = arith.constant 1.000000e+00 : f32
    %280 = vector.broadcast %cst_46 : f32 to vector<8x32xf32>
    %281 = arith.subf %280, %274 : vector<8x32xf32>
    %282 = arith.mulf %281, %279 : vector<8x32xf32>
    %283 = arith.mulf %274, %260 : vector<8x32xf32>
    %284 = arith.addf %282, %283 : vector<8x32xf32>
    %285 = vector.extract_strided_slice %17 {offsets = [88, 0], sizes = [8, 96], strides = [1, 1]} : vector<128x96xf32> to vector<8x96xf32>
    %286 = arith.truncf %284 : vector<8x32xf32> to vector<8x32xbf16>
    %cst_47 = arith.constant dense<0.000000e+00> : vector<8x96xf32>
    %287 = tpu.matmul %286, %2, %cst_47 {dimension_numbers = #tpu.dot_dimension_numbers<[1], [0], [0], [1], [0, 0, 1, 1], [], []>} : vector<8x32xbf16>, vector<32x96xbf16>, vector<8x96xf32> -> vector<8x96xf32>
    %288 = arith.addf %287, %19 : vector<8x96xf32>
    %289 = vector.extract_strided_slice %285 {offsets = [0, 0], sizes = [8, 64], strides = [1, 1]} : vector<8x96xf32> to vector<8x64xf32>
    %290 = vector.extract_strided_slice %288 {offsets = [0, 0], sizes = [8, 64], strides = [1, 1]} : vector<8x96xf32> to vector<8x64xf32>
    %291 = arith.addf %289, %290 : vector<8x64xf32>
    %292 = arith.negf %291 : vector<8x64xf32>
    %293 = math.exp %292 : vector<8x64xf32>
    %cst_48 = arith.constant 1.000000e+00 : f32
    %294 = vector.broadcast %cst_48 : f32 to vector<8x64xf32>
    %295 = arith.addf %294, %293 : vector<8x64xf32>
    %296 = arith.divf %294, %295 : vector<8x64xf32>
    %297 = vector.extract_strided_slice %296 {offsets = [0, 0], sizes = [8, 32], strides = [1, 1]} : vector<8x64xf32> to vector<8x32xf32>
    %298 = vector.extract_strided_slice %296 {offsets = [0, 32], sizes = [8, 32], strides = [1, 1]} : vector<8x64xf32> to vector<8x32xf32>
    %299 = vector.extract_strided_slice %285 {offsets = [0, 64], sizes = [8, 32], strides = [1, 1]} : vector<8x96xf32> to vector<8x32xf32>
    %300 = vector.extract_strided_slice %288 {offsets = [0, 64], sizes = [8, 32], strides = [1, 1]} : vector<8x96xf32> to vector<8x32xf32>
    %301 = arith.mulf %297, %300 : vector<8x32xf32>
    %302 = arith.addf %299, %301 : vector<8x32xf32>
    %303 = math.tanh %302 : vector<8x32xf32>
    %cst_49 = arith.constant 1.000000e+00 : f32
    %304 = vector.broadcast %cst_49 : f32 to vector<8x32xf32>
    %305 = arith.subf %304, %298 : vector<8x32xf32>
    %306 = arith.mulf %305, %303 : vector<8x32xf32>
    %307 = arith.mulf %298, %284 : vector<8x32xf32>
    %308 = arith.addf %306, %307 : vector<8x32xf32>
    %309 = vector.extract_strided_slice %17 {offsets = [96, 0], sizes = [8, 96], strides = [1, 1]} : vector<128x96xf32> to vector<8x96xf32>
    %310 = arith.truncf %308 : vector<8x32xf32> to vector<8x32xbf16>
    %cst_50 = arith.constant dense<0.000000e+00> : vector<8x96xf32>
    %311 = tpu.matmul %310, %2, %cst_50 {dimension_numbers = #tpu.dot_dimension_numbers<[1], [0], [0], [1], [0, 0, 1, 1], [], []>} : vector<8x32xbf16>, vector<32x96xbf16>, vector<8x96xf32> -> vector<8x96xf32>
    %312 = arith.addf %311, %19 : vector<8x96xf32>
    %313 = vector.extract_strided_slice %309 {offsets = [0, 0], sizes = [8, 64], strides = [1, 1]} : vector<8x96xf32> to vector<8x64xf32>
    %314 = vector.extract_strided_slice %312 {offsets = [0, 0], sizes = [8, 64], strides = [1, 1]} : vector<8x96xf32> to vector<8x64xf32>
    %315 = arith.addf %313, %314 : vector<8x64xf32>
    %316 = arith.negf %315 : vector<8x64xf32>
    %317 = math.exp %316 : vector<8x64xf32>
    %cst_51 = arith.constant 1.000000e+00 : f32
    %318 = vector.broadcast %cst_51 : f32 to vector<8x64xf32>
    %319 = arith.addf %318, %317 : vector<8x64xf32>
    %320 = arith.divf %318, %319 : vector<8x64xf32>
    %321 = vector.extract_strided_slice %320 {offsets = [0, 0], sizes = [8, 32], strides = [1, 1]} : vector<8x64xf32> to vector<8x32xf32>
    %322 = vector.extract_strided_slice %320 {offsets = [0, 32], sizes = [8, 32], strides = [1, 1]} : vector<8x64xf32> to vector<8x32xf32>
    %323 = vector.extract_strided_slice %309 {offsets = [0, 64], sizes = [8, 32], strides = [1, 1]} : vector<8x96xf32> to vector<8x32xf32>
    %324 = vector.extract_strided_slice %312 {offsets = [0, 64], sizes = [8, 32], strides = [1, 1]} : vector<8x96xf32> to vector<8x32xf32>
    %325 = arith.mulf %321, %324 : vector<8x32xf32>
    %326 = arith.addf %323, %325 : vector<8x32xf32>
    %327 = math.tanh %326 : vector<8x32xf32>
    %cst_52 = arith.constant 1.000000e+00 : f32
    %328 = vector.broadcast %cst_52 : f32 to vector<8x32xf32>
    %329 = arith.subf %328, %322 : vector<8x32xf32>
    %330 = arith.mulf %329, %327 : vector<8x32xf32>
    %331 = arith.mulf %322, %308 : vector<8x32xf32>
    %332 = arith.addf %330, %331 : vector<8x32xf32>
    %333 = vector.extract_strided_slice %17 {offsets = [104, 0], sizes = [8, 96], strides = [1, 1]} : vector<128x96xf32> to vector<8x96xf32>
    %334 = arith.truncf %332 : vector<8x32xf32> to vector<8x32xbf16>
    %cst_53 = arith.constant dense<0.000000e+00> : vector<8x96xf32>
    %335 = tpu.matmul %334, %2, %cst_53 {dimension_numbers = #tpu.dot_dimension_numbers<[1], [0], [0], [1], [0, 0, 1, 1], [], []>} : vector<8x32xbf16>, vector<32x96xbf16>, vector<8x96xf32> -> vector<8x96xf32>
    %336 = arith.addf %335, %19 : vector<8x96xf32>
    %337 = vector.extract_strided_slice %333 {offsets = [0, 0], sizes = [8, 64], strides = [1, 1]} : vector<8x96xf32> to vector<8x64xf32>
    %338 = vector.extract_strided_slice %336 {offsets = [0, 0], sizes = [8, 64], strides = [1, 1]} : vector<8x96xf32> to vector<8x64xf32>
    %339 = arith.addf %337, %338 : vector<8x64xf32>
    %340 = arith.negf %339 : vector<8x64xf32>
    %341 = math.exp %340 : vector<8x64xf32>
    %cst_54 = arith.constant 1.000000e+00 : f32
    %342 = vector.broadcast %cst_54 : f32 to vector<8x64xf32>
    %343 = arith.addf %342, %341 : vector<8x64xf32>
    %344 = arith.divf %342, %343 : vector<8x64xf32>
    %345 = vector.extract_strided_slice %344 {offsets = [0, 0], sizes = [8, 32], strides = [1, 1]} : vector<8x64xf32> to vector<8x32xf32>
    %346 = vector.extract_strided_slice %344 {offsets = [0, 32], sizes = [8, 32], strides = [1, 1]} : vector<8x64xf32> to vector<8x32xf32>
    %347 = vector.extract_strided_slice %333 {offsets = [0, 64], sizes = [8, 32], strides = [1, 1]} : vector<8x96xf32> to vector<8x32xf32>
    %348 = vector.extract_strided_slice %336 {offsets = [0, 64], sizes = [8, 32], strides = [1, 1]} : vector<8x96xf32> to vector<8x32xf32>
    %349 = arith.mulf %345, %348 : vector<8x32xf32>
    %350 = arith.addf %347, %349 : vector<8x32xf32>
    %351 = math.tanh %350 : vector<8x32xf32>
    %cst_55 = arith.constant 1.000000e+00 : f32
    %352 = vector.broadcast %cst_55 : f32 to vector<8x32xf32>
    %353 = arith.subf %352, %346 : vector<8x32xf32>
    %354 = arith.mulf %353, %351 : vector<8x32xf32>
    %355 = arith.mulf %346, %332 : vector<8x32xf32>
    %356 = arith.addf %354, %355 : vector<8x32xf32>
    %357 = vector.extract_strided_slice %17 {offsets = [112, 0], sizes = [8, 96], strides = [1, 1]} : vector<128x96xf32> to vector<8x96xf32>
    %358 = arith.truncf %356 : vector<8x32xf32> to vector<8x32xbf16>
    %cst_56 = arith.constant dense<0.000000e+00> : vector<8x96xf32>
    %359 = tpu.matmul %358, %2, %cst_56 {dimension_numbers = #tpu.dot_dimension_numbers<[1], [0], [0], [1], [0, 0, 1, 1], [], []>} : vector<8x32xbf16>, vector<32x96xbf16>, vector<8x96xf32> -> vector<8x96xf32>
    %360 = arith.addf %359, %19 : vector<8x96xf32>
    %361 = vector.extract_strided_slice %357 {offsets = [0, 0], sizes = [8, 64], strides = [1, 1]} : vector<8x96xf32> to vector<8x64xf32>
    %362 = vector.extract_strided_slice %360 {offsets = [0, 0], sizes = [8, 64], strides = [1, 1]} : vector<8x96xf32> to vector<8x64xf32>
    %363 = arith.addf %361, %362 : vector<8x64xf32>
    %364 = arith.negf %363 : vector<8x64xf32>
    %365 = math.exp %364 : vector<8x64xf32>
    %cst_57 = arith.constant 1.000000e+00 : f32
    %366 = vector.broadcast %cst_57 : f32 to vector<8x64xf32>
    %367 = arith.addf %366, %365 : vector<8x64xf32>
    %368 = arith.divf %366, %367 : vector<8x64xf32>
    %369 = vector.extract_strided_slice %368 {offsets = [0, 0], sizes = [8, 32], strides = [1, 1]} : vector<8x64xf32> to vector<8x32xf32>
    %370 = vector.extract_strided_slice %368 {offsets = [0, 32], sizes = [8, 32], strides = [1, 1]} : vector<8x64xf32> to vector<8x32xf32>
    %371 = vector.extract_strided_slice %357 {offsets = [0, 64], sizes = [8, 32], strides = [1, 1]} : vector<8x96xf32> to vector<8x32xf32>
    %372 = vector.extract_strided_slice %360 {offsets = [0, 64], sizes = [8, 32], strides = [1, 1]} : vector<8x96xf32> to vector<8x32xf32>
    %373 = arith.mulf %369, %372 : vector<8x32xf32>
    %374 = arith.addf %371, %373 : vector<8x32xf32>
    %375 = math.tanh %374 : vector<8x32xf32>
    %cst_58 = arith.constant 1.000000e+00 : f32
    %376 = vector.broadcast %cst_58 : f32 to vector<8x32xf32>
    %377 = arith.subf %376, %370 : vector<8x32xf32>
    %378 = arith.mulf %377, %375 : vector<8x32xf32>
    %379 = arith.mulf %370, %356 : vector<8x32xf32>
    %380 = arith.addf %378, %379 : vector<8x32xf32>
    %381 = vector.extract_strided_slice %17 {offsets = [120, 0], sizes = [8, 96], strides = [1, 1]} : vector<128x96xf32> to vector<8x96xf32>
    %382 = arith.truncf %380 : vector<8x32xf32> to vector<8x32xbf16>
    %cst_59 = arith.constant dense<0.000000e+00> : vector<8x96xf32>
    %383 = tpu.matmul %382, %2, %cst_59 {dimension_numbers = #tpu.dot_dimension_numbers<[1], [0], [0], [1], [0, 0, 1, 1], [], []>} : vector<8x32xbf16>, vector<32x96xbf16>, vector<8x96xf32> -> vector<8x96xf32>
    %384 = arith.addf %383, %19 : vector<8x96xf32>
    %385 = vector.extract_strided_slice %381 {offsets = [0, 0], sizes = [8, 64], strides = [1, 1]} : vector<8x96xf32> to vector<8x64xf32>
    %386 = vector.extract_strided_slice %384 {offsets = [0, 0], sizes = [8, 64], strides = [1, 1]} : vector<8x96xf32> to vector<8x64xf32>
    %387 = arith.addf %385, %386 : vector<8x64xf32>
    %388 = arith.negf %387 : vector<8x64xf32>
    %389 = math.exp %388 : vector<8x64xf32>
    %cst_60 = arith.constant 1.000000e+00 : f32
    %390 = vector.broadcast %cst_60 : f32 to vector<8x64xf32>
    %391 = arith.addf %390, %389 : vector<8x64xf32>
    %392 = arith.divf %390, %391 : vector<8x64xf32>
    %393 = vector.extract_strided_slice %392 {offsets = [0, 0], sizes = [8, 32], strides = [1, 1]} : vector<8x64xf32> to vector<8x32xf32>
    %394 = vector.extract_strided_slice %392 {offsets = [0, 32], sizes = [8, 32], strides = [1, 1]} : vector<8x64xf32> to vector<8x32xf32>
    %395 = vector.extract_strided_slice %381 {offsets = [0, 64], sizes = [8, 32], strides = [1, 1]} : vector<8x96xf32> to vector<8x32xf32>
    %396 = vector.extract_strided_slice %384 {offsets = [0, 64], sizes = [8, 32], strides = [1, 1]} : vector<8x96xf32> to vector<8x32xf32>
    %397 = arith.mulf %393, %396 : vector<8x32xf32>
    %398 = arith.addf %395, %397 : vector<8x32xf32>
    %399 = math.tanh %398 : vector<8x32xf32>
    %cst_61 = arith.constant 1.000000e+00 : f32
    %400 = vector.broadcast %cst_61 : f32 to vector<8x32xf32>
    %401 = arith.subf %400, %394 : vector<8x32xf32>
    %402 = arith.mulf %401, %399 : vector<8x32xf32>
    %403 = arith.mulf %394, %380 : vector<8x32xf32>
    %404 = arith.addf %402, %403 : vector<8x32xf32>
    %405 = arith.truncf %404 : vector<8x32xf32> to vector<8x32xbf16>
    %cst_62 = arith.constant dense<0.000000e+00> : vector<8x128xf32>
    %406 = tpu.matmul %405, %3, %cst_62 {dimension_numbers = #tpu.dot_dimension_numbers<[1], [0], [0], [1], [0, 0, 1, 1], [], []>} : vector<8x32xbf16>, vector<32x128xbf16>, vector<8x128xf32> -> vector<8x128xf32>
    %407 = vector.broadcast %7 : vector<1x128xf32> to vector<8x128xf32>
    %408 = arith.addf %406, %407 : vector<8x128xf32>
    %c0_63 = arith.constant 0 : index
    %c0_64 = arith.constant 0 : index
    %409 = vector.load %arg3[%c0_63, %c0_64] : memref<8x128xf32, #tpu.memory_space<vmem>>, vector<8x128xf32>
    tpu.vector_store %arg3[%c0_63, %c0_64], %408 {strides = array<i32>} : memref<8x128xf32, #tpu.memory_space<vmem>>, vector<8x128xf32>,
    return
  }
}

</mosaic_0001>

<bundles_post_ra>
// kernel: cpc_with_classifier_forward.1
= control target key start
LH: loop header
LB: loop body
LE: loop exit
PB: predicated region body
PF: predicated region fallthrough
CT: control target
= control target key end

     0   :  { %vm114_vm0 = vcmask 1043456   ;;  %vm89_vm1 = vcmask 64512   ;;  %v1495_v5 = vmov 0   ;;  %vm204_vm2 = vcmask 261120   ;;  %s1496_s28 = smov 64   ;;  %s1497_s4 = smov 96   ;;  %s1781_s1 = inlined_call_operand.vmem [shape: bf16[112,128], index: 1, kind: input, shape index: {}]   ;;  %s1782_s0 = inlined_call_operand.vmem [shape: bf16[128,8], index: 0, kind: input, shape index: {}]   ;;  %s1783_s2 = inlined_call_operand.vmem [shape: f32[8,128], index: 2, kind: input, shape index: {}]   ;;  %s1784_s3 = inlined_call_operand.vmem [shape: f32[8,128], index: 3, kind: output, shape index: {}]  }
   0x1   :  { %v15_v0 = vld [vmem:[%s1781_s1] sm:$0xf]  ;;  %v1532_v4 = vld [vmem:[%s1781_s1 + $0x18] sm:$0xff]  ;;  %v1374_v6 = vld [vmem:[%s1781_s1 + $0x10] sm:$0xff] }
   0x2   :  { %v1524_v1 = vld [vmem:[%s1781_s1 + $0x20] sm:$0xff]  ;;  %v116_v2 = vsel %vm114_vm0, %v15_v0, 0  ;;  %235 = vmatpush.bf16.msra.mxu1 %v1374_v6  ;;  %v1373_v7 = vld [vmem:[%s1781_s1 + $0x8] sm:$0xff] }
   0x3   :  { %v1379_v3 = vld [vmem:[%s1782_s0] sm:$0xff]  ;;  %125 = vmatpush.bf16.msra.mxu0 %v116_v2  ;;  %300 = vmatpush.bf16.msra.mxu2 %v1524_v1 }
   0x4   :  { %359 = vmatpush.bf16.msra.mxu3 %v1524_v1  ;;  %v1554_v9 = vld [vmem:[%s1783_s2] ss:$0 sm:$0xff]  ;;  %v1560_v11 = vld [vmem:[%s1783_s2 + $0x2] ss:$0 sm:$0xff]  ;;  %v1569_v20 = vld [vmem:[%s1783_s2 + $0x1] ss:$0 sm:$0xff] }
   0x6   :  { %1301 = vmatmul.msk.bf16.vlgmr.msra.gmra.mxu0 %vm89_vm1, %v1379_v3  ;;  %236 = vmatpush.bf16.msra.mxu1 %v1373_v7 }
   0x7   :  { %301 = vmatpush.bf16.msra.mxu2 %v1532_v4 }
   0x8   :  { %360 = vmatpush.bf16.msra.mxu3 %v1532_v4 }
   0xa   :  { %302 = vmatmul.bf16.vlgmr.msra.gmra.mxu2 %v1495_v5 }
   0xb   :  { %418 = vmatpush.bf16.msrb.mxu2 %v1524_v1 }
   0xc   :  { %477 = vmatpush.bf16.msrb.mxu3 %v1524_v1 }
   0xf   :  { %419 = vmatpush.bf16.msrb.mxu2 %v1532_v4 }
  0x10   :  { %478 = vmatpush.bf16.msrb.mxu3 %v1532_v4 }
  0x13   :  { %536 = vmatpush.bf16.msra.mxu2 %v1524_v1 }
  0x17   :  { %537 = vmatpush.bf16.msra.mxu2 %v1532_v4 }
  0x83   :  { %v127_v8 = vpop.f32.mrf.mxu0 }
  0x84   :  { %v128_v10 = vadd.f32 %v1554_v9, %v127_v8  ;;  %v1380_v8 = vld [vmem:[%s1782_s0 + $0x8] sm:$0xff] }
  0x85   :  { %1302 = vmatmul.msk.bf16.gmra.mxu0 %vm89_vm1, %v1380_v8 }
  0x86   :  { %v167_v15 = vmax.f32 %v128_v10, 0.0 }
  0x8b   :  { %v129_v12 = vpop.f32.mrf.mxu0 }
  0x8c   :  { %v130_v13 = vadd.f32 %v1554_v9, %v129_v12 }
  0x8d   :  { %v303_v14 = vpop.f32.mrf.mxu2 }
  0x8e   :  { %v168_v16 = vmax.f32 %v130_v13, 0.0  ;;  %v304_v17 = vadd.f32 %v1560_v11, %v303_v14 }
  0x90   :  { %v183_v18 = vpack.c.bf16 %v168_v16, %v167_v15  ;;  %328 = vrot.lane.b32.xlu0 %v304_v17, %s1496_s28 }
  0x92   :  { %1317 = vmatmul.msk.bf16.vlgmr.msra.gmra.mxu1 %vm204_vm2, %v183_v18 }
  0x95   :  { %v305_v19 = vpop.f32.mrf.mxu2 }
 0x102   :  { %v329_v34 = vpop.permute.xlu0 %328  ;;  %v132_v14 = vpop.f32.mrf.mxu0 }
 0x103   :  { %v133_v15 = vadd.f32 %v1554_v9, %v132_v14 }
 0x10a   :  { %v134_v16 = vpop.f32.mrf.mxu0 }
 0x10b   :  { %v135_v18 = vadd.f32 %v1554_v9, %v134_v16 }
 0x10d   :  { %v170_v19 = vmax.f32 %v135_v18, 0.0 }
 0x10f   :  { %v238_v21 = vpop.f32.mrf.mxu1 }
 0x110   :  { %v239_v22 = vadd.f32 %v1569_v20, %v238_v21 }
 0x112   :  { %v307_v23 = vadd.f32 %v304_v17, %v239_v22  ;;  %v169_v17 = vmax.f32 %v133_v15, 0.0 }
 0x114   :  { %v1333_v24 = vmul.f32 -1.442695, %v307_v23  ;;  %v184_v21 = vpack.c.bf16 %v170_v19, %v169_v17 }
 0x116   :  { %1394 = vpow2.f32 %v1333_v24  ;;  %1318 = vmatmul.msk.bf16.gmra.mxu1 %vm204_vm2, %v184_v21 }
 0x117   :  { %v240_v52 = vpop.f32.mrf.mxu1 }
 0x118   :  { %v241_v53 = vadd.f32 %v1569_v20, %v240_v52 }
 0x11c   :  { %v1395_v25 = vpop.eup %1394 }
 0x11d   :  { %v311_v26 = vadd.f32 1.0, %v1395_v25 }
 0x11f   :  { %1396 = vrcp.f32 %v311_v26  ;;  %v323_v30 = vand.u32 2147483648, %v311_v26  ;;  %v321_v32 = vand.u32 2147483647, %v311_v26  ;;  %vm317_vm4 = vweird.f32 %v311_v26 }
 0x121   :  { %v324_v35 = vor.u32 1.1754944e-38, %v323_v30  ;;  %vm322_vm6 = vcmp.eq.f32.partialorder %v321_v32, 8.507059e+37 }
 0x125   :  { %v1397_v27 = vpop.eup %1396 }
 0x126   :  { %v313_v28 = vmul.f32 %v1397_v27, %v311_v26  ;;  %vm318_vm3 = vweird.f32 %v1397_v27 }
 0x127   :  { %vm319_vm5 = vmor %vm317_vm4, %vm318_vm3 }
 0x128   :  { %v314_v29 = vsub.f32 1.0, %v313_v28 }
 0x12a   :  { %v315_v31 = vmul.f32 %v1397_v27, %v314_v29 }
 0x12c   :  { %v316_v33 = vadd.f32 %v1397_v27, %v315_v31 }
 0x12e   :  { %v320_v36 = vsel %vm319_vm5, %v1397_v27, %v316_v33 }
 0x12f   :  { %v325_v37 = vsel %vm322_vm6, %v324_v35, %v320_v36 }
 0x130   :  { %v331_v38 = vmul.f32 %v329_v34, %v325_v37  ;;  %v338_v42 = vsub.f32 1.0, %v325_v37  ;;  %v344_v44 = vmul.f32 0.0, %v325_v37 }
 0x132   :  { %333 = vrot.lane.b32.xlu0 %v331_v38, %s1496_s28 }
 0x193   :  { %v243_v32 = vpop.f32.mrf.mxu1 }
 0x194   :  { %v244_v33 = vadd.f32 %v1569_v20, %v243_v32 }
 0x1a4   :  { %v334_v39 = vpop.permute.xlu0 %333 }
 0x1a5   :  { %v336_v40 = vadd.f32 %v334_v39, %v239_v22 }
 0x1a7   :  { %1398 = vtanh.f32 %v336_v40 }
 0x1ad   :  { %v1399_v41 = vpop.eup %1398 }
 0x1ae   :  { %340 = vrot.lane.b32.xlu1 %v1399_v41, %s1497_s4 }
 0x220   :  { %v341_v43 = vpop.permute.xlu1 %340 }
 0x221   :  { %v343_v45 = vmul.f32 %v341_v43, %v338_v42 }
 0x223   :  { %v345_v46 = vadd.f32 %v344_v44, %v343_v45 }
 0x225   :  { %v346_v47 = vpack.c.bf16 %v345_v46, %v345_v46 }
 0x227   :  { %348 = vrot.lane.b32.xlu1 %v346_v47, %s1497_s4 }
 0x299   :  { %v349_v48 = vpop.permute.xlu1 %348 }
 0x29a   :  { %1334 = vmatmul.msk.bf16.vlgmr.msra.gmra.mxu3 %vm204_vm2, %v349_v48 }
 0x29b   :  { %595 = vmatpush.bf16.msra.mxu3 %v1524_v1 }
 0x29f   :  { %596 = vmatpush.bf16.msra.mxu3 %v1532_v4 }
 0x31d   :  { %v362_v49 = vpop.f32.mrf.mxu3 }
 0x31e   :  { %v363_v50 = vadd.f32 %v1560_v11, %v362_v49 }
 0x320   :  { %387 = vrot.lane.b32.xlu2 %v363_v50, %s1496_s28  ;;  %v366_v54 = vadd.f32 %v363_v50, %v241_v53 }
 0x322   :  { %v1335_v55 = vmul.f32 -1.442695, %v366_v54 }
 0x324   :  { %1400 = vpow2.f32 %v1335_v55 }
 0x325   :  { %v364_v51 = vpop.f32.mrf.mxu3 }
 0x32a   :  { %v1401_v56 = vpop.eup %1400 }
 0x32b   :  { %v370_v57 = vadd.f32 1.0, %v1401_v56 }
 0x32d   :  { %1402 = vrcp.f32 %v370_v57  ;;  %v382_v63 = vand.u32 2147483648, %v370_v57  ;;  %vm376_vm8 = vweird.f32 %v370_v57  ;;  %v380_v0 = vand.u32 2147483647, %v370_v57 }
 0x32f   :  { %v383_v3 = vor.u32 1.1754944e-38, %v382_v63  ;;  %vm381_vm10 = vcmp.eq.f32.partialorder %v380_v0, 8.507059e+37  ;;  %v245_v63 = vpop.f32.mrf.mxu1 }
 0x330   :  { %v246_v0 = vadd.f32 %v1569_v20, %v245_v63 }
 0x333   :  { %v1403_v58 = vpop.eup %1402 }
 0x334   :  { %v372_v59 = vmul.f32 %v1403_v58, %v370_v57  ;;  %vm377_vm7 = vweird.f32 %v1403_v58 }
 0x335   :  { %vm378_vm9 = vmor %vm376_vm8, %vm377_vm7 }
 0x336   :  { %v373_v60 = vsub.f32 1.0, %v372_v59 }
 0x338   :  { %v374_v61 = vmul.f32 %v1403_v58, %v373_v60 }
 0x33a   :  { %v375_v62 = vadd.f32 %v1403_v58, %v374_v61 }
 0x33c   :  { %v379_v2 = vsel %vm378_vm9, %v1403_v58, %v375_v62 }
 0x33d   :  { %v384_v6 = vsel %vm381_vm10, %v383_v3, %v379_v2 }
 0x33e   :  { %v397_v22 = vsub.f32 1.0, %v384_v6  ;;  %v403_v24 = vmul.f32 %v384_v6, %v345_v46 }
 0x37a   :  { %v388_v5 = vpop.permute.xlu2 %387 }
 0x37b   :  { %v390_v7 = vmul.f32 %v388_v5, %v384_v6 }
 0x37d   :  { %392 = vrot.lane.b32.xlu2 %v390_v7, %s1496_s28 }
 0x3d7   :  { %v393_v10 = vpop.permute.xlu2 %392 }
 0x3d8   :  { %v395_v12 = vadd.f32 %v393_v10, %v241_v53 }
 0x3da   :  { %1404 = vtanh.f32 %v395_v12 }
 0x3e0   :  { %v1405_v13 = vpop.eup %1404 }
 0x3e1   :  { %399 = vrot.lane.b32.xlu0 %v1405_v13, %s1497_s4 }
 0x453   :  { %v400_v23 = vpop.permute.xlu0 %399 }
 0x454   :  { %v402_v25 = vmul.f32 %v400_v23, %v397_v22  ;;  %v1381_v22 = vld [vmem:[%s1782_s0 + $0x10] sm:$0xff] }
 0x455   :  { %1303 = vmatmul.msk.bf16.gmra.mxu0 %vm89_vm1, %v1381_v22 }
 0x456   :  { %v404_v26 = vadd.f32 %v403_v24, %v402_v25 }
 0x458   :  { %v405_v27 = vpack.c.bf16 %v404_v26, %v404_v26 }
 0x45a   :  { %407 = vrot.lane.b32.xlu1 %v405_v27, %s1497_s4 }
 0x4cc   :  { %v408_v28 = vpop.permute.xlu1 %407 }
 0x4cd   :  { %1336 = vmatmul.msk.bf16.vlgmr.msrb.gmra.mxu2 %vm204_vm2, %v408_v28 }
 0x4ce   :  { %654 = vmatpush.bf16.msrb.mxu2 %v1524_v1 }
 0x4d2   :  { %655 = vmatpush.bf16.msrb.mxu2 %v1532_v4  ;;  %v137_v32 = vpop.f32.mrf.mxu0 }
 0x550   :  { %v421_v29 = vpop.f32.mrf.mxu2 }
 0x551   :  { %v422_v30 = vadd.f32 %v1560_v11, %v421_v29 }
 0x553   :  { %446 = vrot.lane.b32.xlu2 %v422_v30, %s1496_s28  ;;  %v425_v34 = vadd.f32 %v422_v30, %v244_v33 }
 0x555   :  { %v1337_v35 = vmul.f32 -1.442695, %v425_v34  ;;  %v139_v34 = vpop.f32.mrf.mxu0 }
 0x557   :  { %1406 = vpow2.f32 %v1337_v35 }
 0x558   :  { %v423_v31 = vpop.f32.mrf.mxu2 }
 0x55d   :  { %v1407_v36 = vpop.eup %1406 }
 0x55e   :  { %v429_v37 = vadd.f32 1.0, %v1407_v36  ;;  %v140_v36 = vadd.f32 %v1554_v9, %v139_v34 }
 0x560   :  { %1408 = vrcp.f32 %v429_v37  ;;  %v441_v43 = vand.u32 2147483648, %v429_v37  ;;  %vm435_vm12 = vweird.f32 %v429_v37  ;;  %v439_v44 = vand.u32 2147483647, %v429_v37 }
 0x562   :  { %v442_v46 = vor.u32 1.1754944e-38, %v441_v43  ;;  %vm440_vm14 = vcmp.eq.f32.partialorder %v439_v44, 8.507059e+37 }
 0x566   :  { %v1409_v38 = vpop.eup %1408 }
 0x567   :  { %v431_v39 = vmul.f32 %v1409_v38, %v429_v37  ;;  %vm436_vm11 = vweird.f32 %v1409_v38  ;;  %v172_v37 = vmax.f32 %v140_v36, 0.0 }
 0x568   :  { %vm437_vm13 = vmor %vm435_vm12, %vm436_vm11 }
 0x569   :  { %v432_v40 = vsub.f32 1.0, %v431_v39 }
 0x56b   :  { %v433_v41 = vmul.f32 %v1409_v38, %v432_v40 }
 0x56d   :  { %v434_v42 = vadd.f32 %v1409_v38, %v433_v41 }
 0x56f   :  { %v438_v45 = vsel %vm437_vm13, %v1409_v38, %v434_v42 }
 0x570   :  { %v443_v48 = vsel %vm440_vm14, %v442_v46, %v438_v45 }
 0x571   :  { %v456_v53 = vsub.f32 1.0, %v443_v48  ;;  %v462_v55 = vmul.f32 %v443_v48, %v404_v26 }
 0x5ad   :  { %v447_v47 = vpop.permute.xlu2 %446 }
 0x5ae   :  { %v449_v49 = vmul.f32 %v447_v47, %v443_v48 }
 0x5b0   :  { %451 = vrot.lane.b32.xlu0 %v449_v49, %s1496_s28 }
 0x622   :  { %v452_v50 = vpop.permute.xlu0 %451 }
 0x623   :  { %v454_v51 = vadd.f32 %v452_v50, %v244_v33  ;;  %v138_v33 = vadd.f32 %v1554_v9, %v137_v32 }
 0x625   :  { %1410 = vtanh.f32 %v454_v51  ;;  %v171_v35 = vmax.f32 %v138_v33, 0.0  ;;  %v1382_v33 = vld [vmem:[%s1782_s0 + $0x18] sm:$0xff] }
 0x626   :  { %1304 = vmatmul.msk.bf16.gmra.mxu0 %vm89_vm1, %v1382_v33 }
 0x627   :  { %v185_v38 = vpack.c.bf16 %v172_v37, %v171_v35 }
 0x629   :  { %1319 = vmatmul.msk.bf16.gmra.mxu1 %vm204_vm2, %v185_v38 }
 0x62b   :  { %v1411_v52 = vpop.eup %1410 }
 0x62c   :  { %458 = vrot.lane.b32.xlu1 %v1411_v52, %s1497_s4 }
 0x69e   :  { %v459_v54 = vpop.permute.xlu1 %458 }
 0x69f   :  { %v461_v56 = vmul.f32 %v459_v54, %v456_v53 }
 0x6a1   :  { %v463_v57 = vadd.f32 %v462_v55, %v461_v56 }
 0x6a3   :  { %v464_v58 = vpack.c.bf16 %v463_v57, %v463_v57  ;;  %v142_v37 = vpop.f32.mrf.mxu0 }
 0x6a4   :  { %v143_v38 = vadd.f32 %v1554_v9, %v142_v37 }
 0x6a5   :  { %466 = vrot.lane.b32.xlu2 %v464_v58, %s1497_s4 }
 0x6a6   :  { %v248_v43 = vpop.f32.mrf.mxu1 }
 0x6a7   :  { %v249_v44 = vadd.f32 %v1569_v20, %v248_v43 }
 0x6ff   :  { %v467_v59 = vpop.permute.xlu2 %466 }
 0x700   :  { %1338 = vmatmul.msk.bf16.vlgmr.msrb.gmra.mxu3 %vm204_vm2, %v467_v59 }
 0x701   :  { %713 = vmatpush.bf16.msrb.mxu3 %v1524_v1 }
 0x705   :  { %714 = vmatpush.bf16.msrb.mxu3 %v1532_v4 }
 0x783   :  { %v480_v60 = vpop.f32.mrf.mxu3 }
 0x784   :  { %v481_v61 = vadd.f32 %v1560_v11, %v480_v60 }
 0x786   :  { %505 = vrot.lane.b32.xlu0 %v481_v61, %s1496_s28  ;;  %v484_v2 = vadd.f32 %v481_v61, %v246_v0 }
 0x788   :  { %v1339_v3 = vmul.f32 -1.442695, %v484_v2 }
 0x78a   :  { %1412 = vpow2.f32 %v1339_v3 }
 0x78b   :  { %v482_v62 = vpop.f32.mrf.mxu3 }
 0x790   :  { %v1413_v5 = vpop.eup %1412 }
 0x791   :  { %v488_v6 = vadd.f32 1.0, %v1413_v5 }
 0x793   :  { %1414 = vrcp.f32 %v488_v6  ;;  %v500_v14 = vand.u32 2147483648, %v488_v6  ;;  %vm494_vm0 = vweird.f32 %v488_v6  ;;  %v498_v15 = vand.u32 2147483647, %v488_v6 }
 0x795   :  { %v501_v17 = vor.u32 1.1754944e-38, %v500_v14  ;;  %vm499_vm4 = vcmp.eq.f32.partialorder %v498_v15, 8.507059e+37  ;;  %v250_v14 = vpop.f32.mrf.mxu1 }
 0x796   :  { %v251_v15 = vadd.f32 %v1569_v20, %v250_v14 }
 0x799   :  { %v1415_v7 = vpop.eup %1414 }
 0x79a   :  { %v490_v8 = vmul.f32 %v1415_v7, %v488_v6  ;;  %vm495_vm15 = vweird.f32 %v1415_v7 }
 0x79b   :  { %vm496_vm3 = vmor %vm494_vm0, %vm495_vm15 }
 0x79c   :  { %v491_v10 = vsub.f32 1.0, %v490_v8 }
 0x79e   :  { %v492_v12 = vmul.f32 %v1415_v7, %v491_v10 }
 0x7a0   :  { %v493_v13 = vadd.f32 %v1415_v7, %v492_v12 }
 0x7a2   :  { %v497_v16 = vsel %vm496_vm3, %v1415_v7, %v493_v13 }
 0x7a3   :  { %v502_v19 = vsel %vm499_vm4, %v501_v17, %v497_v16 }
 0x7a4   :  { %v515_v26 = vsub.f32 1.0, %v502_v19  ;;  %v521_v28 = vmul.f32 %v502_v19, %v463_v57 }
 0x7f8   :  { %v506_v18 = vpop.permute.xlu0 %505 }
 0x7f9   :  { %v508_v21 = vmul.f32 %v506_v18, %v502_v19 }
 0x7fb   :  { %510 = vrot.lane.b32.xlu1 %v508_v21, %s1496_s28 }
 0x86d   :  { %v511_v23 = vpop.permute.xlu1 %510 }
 0x86e   :  { %v513_v24 = vadd.f32 %v511_v23, %v246_v0 }
 0x870   :  { %1416 = vtanh.f32 %v513_v24 }
 0x876   :  { %v1417_v25 = vpop.eup %1416 }
 0x877   :  { %517 = vrot.lane.b32.xlu2 %v1417_v25, %s1497_s4 }
 0x8d1   :  { %v518_v27 = vpop.permute.xlu2 %517 }
 0x8d2   :  { %v520_v29 = vmul.f32 %v518_v27, %v515_v26 }
 0x8d4   :  { %v522_v30 = vadd.f32 %v521_v28, %v520_v29 }
 0x8d6   :  { %v523_v31 = vpack.c.bf16 %v522_v30, %v522_v30 }
 0x8d8   :  { %525 = vrot.lane.b32.xlu0 %v523_v31, %s1497_s4 }
 0x94a   :  { %v526_v39 = vpop.permute.xlu0 %525 }
 0x94b   :  { %1340 = vmatmul.msk.bf16.vlgmr.msra.gmra.mxu2 %vm204_vm2, %v526_v39  ;;  %v144_v39 = vpop.f32.mrf.mxu0 }
 0x94c   :  { %772 = vmatpush.bf16.msra.mxu2 %v1524_v1 }
 0x950   :  { %773 = vmatpush.bf16.msra.mxu2 %v1532_v4 }
 0x9ce   :  { %v539_v40 = vpop.f32.mrf.mxu2 }
 0x9cf   :  { %v540_v41 = vadd.f32 %v1560_v11, %v539_v40  ;;  %v173_v40 = vmax.f32 %v143_v38, 0.0 }
 0x9d1   :  { %564 = vrot.lane.b32.xlu1 %v540_v41, %s1496_s28  ;;  %v543_v45 = vadd.f32 %v540_v41, %v249_v44  ;;  %v145_v41 = vadd.f32 %v1554_v9, %v144_v39 }
 0x9d3   :  { %v1341_v46 = vmul.f32 -1.442695, %v543_v45 }
 0x9d5   :  { %1418 = vpow2.f32 %v1341_v46 }
 0x9d6   :  { %v541_v42 = vpop.f32.mrf.mxu2 }
 0x9d7   :  { %v174_v42 = vmax.f32 %v145_v41, 0.0 }
 0x9d9   :  { %v186_v43 = vpack.c.bf16 %v174_v42, %v173_v40 }
 0x9db   :  { %v1419_v47 = vpop.eup %1418  ;;  %1320 = vmatmul.msk.bf16.gmra.mxu1 %vm204_vm2, %v186_v43 }
 0x9dc   :  { %v547_v48 = vadd.f32 1.0, %v1419_v47 }
 0x9de   :  { %1420 = vrcp.f32 %v547_v48  ;;  %v559_v54 = vand.u32 2147483648, %v547_v48  ;;  %vm553_vm6 = vweird.f32 %v547_v48  ;;  %v557_v55 = vand.u32 2147483647, %v547_v48 }
 0x9e0   :  { %v560_v57 = vor.u32 1.1754944e-38, %v559_v54  ;;  %vm558_vm8 = vcmp.eq.f32.partialorder %v557_v55, 8.507059e+37 }
 0x9e4   :  { %v1421_v49 = vpop.eup %1420 }
 0x9e5   :  { %v549_v50 = vmul.f32 %v1421_v49, %v547_v48  ;;  %vm554_vm5 = vweird.f32 %v1421_v49 }
 0x9e6   :  { %vm555_vm7 = vmor %vm553_vm6, %vm554_vm5 }
 0x9e7   :  { %v550_v51 = vsub.f32 1.0, %v549_v50 }
 0x9e9   :  { %v551_v52 = vmul.f32 %v1421_v49, %v550_v51 }
 0x9eb   :  { %v552_v53 = vadd.f32 %v1421_v49, %v551_v52 }
 0x9ed   :  { %v556_v56 = vsel %vm555_vm7, %v1421_v49, %v552_v53 }
 0x9ee   :  { %v561_v59 = vsel %vm558_vm8, %v560_v57, %v556_v56 }
 0x9ef   :  { %v574_v0 = vsub.f32 1.0, %v561_v59  ;;  %v580_v3 = vmul.f32 %v561_v59, %v522_v30 }
 0xa43   :  { %v565_v58 = vpop.permute.xlu1 %564 }
 0xa44   :  { %v567_v60 = vmul.f32 %v565_v58, %v561_v59 }
 0xa46   :  { %569 = vrot.lane.b32.xlu2 %v567_v60, %s1496_s28 }
 0xa58   :  { %v253_v54 = vpop.f32.mrf.mxu1 }
 0xa59   :  { %v254_v55 = vadd.f32 %v1569_v20, %v253_v54 }
 0xaa0   :  { %v570_v61 = vpop.permute.xlu2 %569 }
 0xaa1   :  { %v572_v62 = vadd.f32 %v570_v61, %v249_v44 }
 0xaa3   :  { %1422 = vtanh.f32 %v572_v62 }
 0xaa9   :  { %v1423_v63 = vpop.eup %1422 }
 0xaaa   :  { %576 = vrot.lane.b32.xlu0 %v1423_v63, %s1497_s4 }
 0xb1c   :  { %v577_v2 = vpop.permute.xlu0 %576 }
 0xb1d   :  { %v579_v5 = vmul.f32 %v577_v2, %v574_v0 }
 0xb1f   :  { %v581_v6 = vadd.f32 %v580_v3, %v579_v5 }
 0xb21   :  { %v582_v7 = vpack.c.bf16 %v581_v6, %v581_v6 }
 0xb23   :  { %584 = vrot.lane.b32.xlu1 %v582_v7, %s1497_s4 }
 0xb95   :  { %v585_v8 = vpop.permute.xlu1 %584 }
 0xb96   :  { %1342 = vmatmul.msk.bf16.vlgmr.msra.gmra.mxu3 %vm204_vm2, %v585_v8 }
 0xb97   :  { %831 = vmatpush.bf16.msra.mxu3 %v1524_v1 }
 0xb9b   :  { %832 = vmatpush.bf16.msra.mxu3 %v1532_v4 }
 0xc19   :  { %v598_v10 = vpop.f32.mrf.mxu3 }
 0xc1a   :  { %v599_v12 = vadd.f32 %v1560_v11, %v598_v10 }
 0xc1c   :  { %623 = vrot.lane.b32.xlu2 %v599_v12, %s1496_s28  ;;  %v602_v16 = vadd.f32 %v599_v12, %v251_v15 }
 0xc1e   :  { %v1343_v17 = vmul.f32 -1.442695, %v602_v16 }
 0xc20   :  { %1424 = vpow2.f32 %v1343_v17 }
 0xc21   :  { %v600_v13 = vpop.f32.mrf.mxu3 }
 0xc26   :  { %v1425_v18 = vpop.eup %1424 }
 0xc27   :  { %v606_v19 = vadd.f32 1.0, %v1425_v18 }
 0xc29   :  { %1426 = vrcp.f32 %v606_v19  ;;  %v618_v26 = vand.u32 2147483648, %v606_v19  ;;  %vm612_vm10 = vweird.f32 %v606_v19  ;;  %v616_v27 = vand.u32 2147483647, %v606_v19 }
 0xc2b   :  { %v619_v29 = vor.u32 1.1754944e-38, %v618_v26  ;;  %vm617_vm12 = vcmp.eq.f32.partialorder %v616_v27, 8.507059e+37  ;;  %v255_v26 = vpop.f32.mrf.mxu1 }
 0xc2c   :  { %v256_v27 = vadd.f32 %v1569_v20, %v255_v26 }
 0xc2f   :  { %v1427_v21 = vpop.eup %1426 }
 0xc30   :  { %v608_v22 = vmul.f32 %v1427_v21, %v606_v19  ;;  %vm613_vm9 = vweird.f32 %v1427_v21 }
 0xc31   :  { %vm614_vm11 = vmor %vm612_vm10, %vm613_vm9 }
 0xc32   :  { %v609_v23 = vsub.f32 1.0, %v608_v22 }
 0xc34   :  { %v610_v24 = vmul.f32 %v1427_v21, %v609_v23 }
 0xc36   :  { %v611_v25 = vadd.f32 %v1427_v21, %v610_v24 }
 0xc38   :  { %v615_v28 = vsel %vm614_vm11, %v1427_v21, %v611_v25 }
 0xc39   :  { %v620_v31 = vsel %vm617_vm12, %v619_v29, %v615_v28 }
 0xc3a   :  { %v633_v44 = vsub.f32 1.0, %v620_v31  ;;  %v639_v46 = vmul.f32 %v620_v31, %v581_v6 }
 0xc76   :  { %v624_v30 = vpop.permute.xlu2 %623 }
 0xc77   :  { %v626_v32 = vmul.f32 %v624_v30, %v620_v31 }
 0xc79   :  { %628 = vrot.lane.b32.xlu0 %v626_v32, %s1496_s28 }
 0xceb   :  { %v629_v34 = vpop.permute.xlu0 %628 }
 0xcec   :  { %v631_v35 = vadd.f32 %v629_v34, %v251_v15 }
 0xcee   :  { %1428 = vtanh.f32 %v631_v35 }
 0xcf4   :  { %v1429_v36 = vpop.eup %1428 }
 0xcf5   :  { %635 = vrot.lane.b32.xlu1 %v1429_v36, %s1497_s4 }
 0xd67   :  { %v636_v45 = vpop.permute.xlu1 %635 }
 0xd68   :  { %v638_v47 = vmul.f32 %v636_v45, %v633_v44  ;;  %v1383_v44 = vld [vmem:[%s1782_s0 + $0x20] sm:$0xff] }
 0xd69   :  { %1305 = vmatmul.msk.bf16.gmra.mxu0 %vm89_vm1, %v1383_v44 }
 0xd6a   :  { %v640_v48 = vadd.f32 %v639_v46, %v638_v47 }
 0xd6c   :  { %v641_v49 = vpack.c.bf16 %v640_v48, %v640_v48 }
 0xd6e   :  { %643 = vrot.lane.b32.xlu2 %v641_v49, %s1497_s4 }
 0xdc8   :  { %v644_v50 = vpop.permute.xlu2 %643 }
 0xdc9   :  { %1344 = vmatmul.msk.bf16.vlgmr.msrb.gmra.mxu2 %vm204_vm2, %v644_v50 }
 0xdca   :  { %890 = vmatpush.bf16.msrb.mxu2 %v1524_v1 }
 0xdce   :  { %891 = vmatpush.bf16.msrb.mxu2 %v1532_v4 }
 0xe4c   :  { %v657_v51 = vpop.f32.mrf.mxu2 }
 0xe4d   :  { %v658_v52 = vadd.f32 %v1560_v11, %v657_v51 }
 0xe4f   :  { %682 = vrot.lane.b32.xlu0 %v658_v52, %s1496_s28  ;;  %v661_v56 = vadd.f32 %v658_v52, %v254_v55 }
 0xe51   :  { %v1345_v57 = vmul.f32 -1.442695, %v661_v56 }
 0xe53   :  { %1430 = vpow2.f32 %v1345_v57 }
 0xe54   :  { %v659_v53 = vpop.f32.mrf.mxu2 }
 0xe59   :  { %v1431_v58 = vpop.eup %1430 }
 0xe5a   :  { %v665_v59 = vadd.f32 1.0, %v1431_v58 }
 0xe5c   :  { %1432 = vrcp.f32 %v665_v59  ;;  %v677_v2 = vand.u32 2147483648, %v665_v59  ;;  %vm671_vm14 = vweird.f32 %v665_v59  ;;  %v675_v3 = vand.u32 2147483647, %v665_v59 }
 0xe5e   :  { %v678_v6 = vor.u32 1.1754944e-38, %v677_v2  ;;  %vm676_vm0 = vcmp.eq.f32.partialorder %v675_v3, 8.507059e+37 }
 0xe62   :  { %v1433_v60 = vpop.eup %1432 }
 0xe63   :  { %v667_v61 = vmul.f32 %v1433_v60, %v665_v59  ;;  %vm672_vm13 = vweird.f32 %v1433_v60 }
 0xe64   :  { %vm673_vm15 = vmor %vm671_vm14, %vm672_vm13 }
 0xe65   :  { %v668_v62 = vsub.f32 1.0, %v667_v61 }
 0xe67   :  { %v669_v63 = vmul.f32 %v1433_v60, %v668_v62 }
 0xe69   :  { %v670_v0 = vadd.f32 %v1433_v60, %v669_v63 }
 0xe6b   :  { %v674_v5 = vsel %vm673_vm15, %v1433_v60, %v670_v0 }
 0xe6c   :  { %v679_v8 = vsel %vm676_vm0, %v678_v6, %v674_v5 }
 0xe6d   :  { %v692_v15 = vsub.f32 1.0, %v679_v8  ;;  %v698_v17 = vmul.f32 %v679_v8, %v640_v48  ;;  %v147_v48 = vpop.f32.mrf.mxu0 }
 0xe6e   :  { %v148_v49 = vadd.f32 %v1554_v9, %v147_v48 }
 0xe70   :  { %v175_v51 = vmax.f32 %v148_v49, 0.0 }
 0xe75   :  { %v149_v50 = vpop.f32.mrf.mxu0 }
 0xe76   :  { %v150_v52 = vadd.f32 %v1554_v9, %v149_v50 }
 0xe78   :  { %v176_v53 = vmax.f32 %v150_v52, 0.0  ;;  %v1384_v52 = vld [vmem:[%s1782_s0 + $0x28] sm:$0xff] }
 0xe79   :  { %1306 = vmatmul.msk.bf16.gmra.mxu0 %vm89_vm1, %v1384_v52 }
 0xe7a   :  { %v187_v54 = vpack.c.bf16 %v176_v53, %v175_v51 }
 0xe7c   :  { %1321 = vmatmul.msk.bf16.gmra.mxu1 %vm204_vm2, %v187_v54 }
 0xec1   :  { %v683_v7 = vpop.permute.xlu0 %682 }
 0xec2   :  { %v685_v10 = vmul.f32 %v683_v7, %v679_v8 }
 0xec4   :  { %687 = vrot.lane.b32.xlu1 %v685_v10, %s1496_s28 }
 0xef9   :  { %v258_v2 = vpop.f32.mrf.mxu1 }
 0xefa   :  { %v259_v3 = vadd.f32 %v1569_v20, %v258_v2 }
 0xf36   :  { %v688_v12 = vpop.permute.xlu1 %687 }
 0xf37   :  { %v690_v13 = vadd.f32 %v688_v12, %v254_v55 }
 0xf39   :  { %1434 = vtanh.f32 %v690_v13 }
 0xf3f   :  { %v1435_v14 = vpop.eup %1434 }
 0xf40   :  { %694 = vrot.lane.b32.xlu2 %v1435_v14, %s1497_s4 }
 0xf9a   :  { %v695_v16 = vpop.permute.xlu2 %694 }
 0xf9b   :  { %v697_v18 = vmul.f32 %v695_v16, %v692_v15 }
 0xf9d   :  { %v699_v19 = vadd.f32 %v698_v17, %v697_v18 }
 0xf9f   :  { %v700_v21 = vpack.c.bf16 %v699_v19, %v699_v19 }
 0xfa1   :  { %702 = vrot.lane.b32.xlu0 %v700_v21, %s1497_s4 }
0x1013   :  { %v703_v22 = vpop.permute.xlu0 %702 }
0x1014   :  { %1346 = vmatmul.msk.bf16.vlgmr.msrb.gmra.mxu3 %vm204_vm2, %v703_v22 }
0x1015   :  { %949 = vmatpush.bf16.msrb.mxu3 %v1524_v1 }
0x1019   :  { %950 = vmatpush.bf16.msrb.mxu3 %v1532_v4 }
0x1097   :  { %v716_v23 = vpop.f32.mrf.mxu3 }
0x1098   :  { %v717_v24 = vadd.f32 %v1560_v11, %v716_v23 }
0x109a   :  { %741 = vrot.lane.b32.xlu1 %v717_v24, %s1496_s28  ;;  %v720_v28 = vadd.f32 %v717_v24, %v256_v27 }
0x109c   :  { %v1347_v29 = vmul.f32 -1.442695, %v720_v28 }
0x109e   :  { %1436 = vpow2.f32 %v1347_v29 }
0x109f   :  { %v718_v25 = vpop.f32.mrf.mxu3 }
0x10a4   :  { %v1437_v30 = vpop.eup %1436 }
0x10a5   :  { %v724_v31 = vadd.f32 1.0, %v1437_v30 }
0x10a7   :  { %1438 = vrcp.f32 %v724_v31  ;;  %v736_v37 = vand.u32 2147483648, %v724_v31  ;;  %vm730_vm4 = vweird.f32 %v724_v31  ;;  %v734_v38 = vand.u32 2147483647, %v724_v31 }
0x10a9   :  { %v737_v40 = vor.u32 1.1754944e-38, %v736_v37  ;;  %vm735_vm6 = vcmp.eq.f32.partialorder %v734_v38, 8.507059e+37  ;;  %v260_v37 = vpop.f32.mrf.mxu1 }
0x10aa   :  { %v261_v38 = vadd.f32 %v1569_v20, %v260_v37 }
0x10ad   :  { %v1439_v32 = vpop.eup %1438 }
0x10ae   :  { %v726_v33 = vmul.f32 %v1439_v32, %v724_v31  ;;  %vm731_vm3 = vweird.f32 %v1439_v32 }
0x10af   :  { %vm732_vm5 = vmor %vm730_vm4, %vm731_vm3 }
0x10b0   :  { %v727_v34 = vsub.f32 1.0, %v726_v33 }
0x10b2   :  { %v728_v35 = vmul.f32 %v1439_v32, %v727_v34 }
0x10b4   :  { %v729_v36 = vadd.f32 %v1439_v32, %v728_v35 }
0x10b6   :  { %v733_v39 = vsel %vm732_vm5, %v1439_v32, %v729_v36 }
0x10b7   :  { %v738_v42 = vsel %vm735_vm6, %v737_v40, %v733_v39 }
0x10b8   :  { %v751_v55 = vsub.f32 1.0, %v738_v42  ;;  %v757_v57 = vmul.f32 %v738_v42, %v699_v19 }
0x110c   :  { %v742_v41 = vpop.permute.xlu1 %741 }
0x110d   :  { %v744_v43 = vmul.f32 %v742_v41, %v738_v42 }
0x110f   :  { %746 = vrot.lane.b32.xlu2 %v744_v43, %s1496_s28 }
0x1169   :  { %v747_v45 = vpop.permute.xlu2 %746 }
0x116a   :  { %v749_v46 = vadd.f32 %v747_v45, %v256_v27 }
0x116c   :  { %1440 = vtanh.f32 %v749_v46 }
0x1172   :  { %v1441_v47 = vpop.eup %1440 }
0x1173   :  { %753 = vrot.lane.b32.xlu0 %v1441_v47, %s1497_s4 }
0x11e5   :  { %v754_v56 = vpop.permute.xlu0 %753 }
0x11e6   :  { %v756_v58 = vmul.f32 %v754_v56, %v751_v55 }
0x11e8   :  { %v758_v59 = vadd.f32 %v757_v57, %v756_v58 }
0x11ea   :  { %v759_v60 = vpack.c.bf16 %v758_v59, %v758_v59 }
0x11ec   :  { %761 = vrot.lane.b32.xlu1 %v759_v60, %s1497_s4 }
0x125e   :  { %v762_v61 = vpop.permute.xlu1 %761 }
0x125f   :  { %1348 = vmatmul.msk.bf16.vlgmr.msra.gmra.mxu2 %vm204_vm2, %v762_v61 }
0x1260   :  { %1008 = vmatpush.bf16.msra.mxu2 %v1524_v1 }
0x1264   :  { %1009 = vmatpush.bf16.msra.mxu2 %v1532_v4 }
0x12e2   :  { %v775_v62 = vpop.f32.mrf.mxu2 }
0x12e3   :  { %v776_v63 = vadd.f32 %v1560_v11, %v775_v62  ;;  %v152_v62 = vpop.f32.mrf.mxu0 }
0x12e5   :  { %800 = vrot.lane.b32.xlu2 %v776_v63, %s1496_s28  ;;  %v779_v5 = vadd.f32 %v776_v63, %v259_v3  ;;  %v153_v63 = vadd.f32 %v1554_v9, %v152_v62  ;;  %v1385_v62 = vld [vmem:[%s1782_s0 + $0x30] sm:$0xff] }
0x12e6   :  { %1307 = vmatmul.msk.bf16.gmra.mxu0 %vm89_vm1, %v1385_v62 }
0x12e7   :  { %v1349_v6 = vmul.f32 -1.442695, %v779_v5  ;;  %v177_v2 = vmax.f32 %v153_v63, 0.0 }
0x12e9   :  { %1442 = vpow2.f32 %v1349_v6 }
0x12ea   :  { %v777_v0 = vpop.f32.mrf.mxu2 }
0x12eb   :  { %v154_v0 = vpop.f32.mrf.mxu0 }
0x12ef   :  { %v1443_v7 = vpop.eup %1442 }
0x12f0   :  { %v783_v8 = vadd.f32 1.0, %v1443_v7 }
0x12f2   :  { %1444 = vrcp.f32 %v783_v8  ;;  %v795_v16 = vand.u32 2147483648, %v783_v8  ;;  %vm789_vm8 = vweird.f32 %v783_v8  ;;  %v793_v17 = vand.u32 2147483647, %v783_v8 }
0x12f4   :  { %v796_v19 = vor.u32 1.1754944e-38, %v795_v16  ;;  %vm794_vm10 = vcmp.eq.f32.partialorder %v793_v17, 8.507059e+37 }
0x12f8   :  { %v1445_v10 = vpop.eup %1444 }
0x12f9   :  { %v785_v12 = vmul.f32 %v1445_v10, %v783_v8  ;;  %vm790_vm7 = vweird.f32 %v1445_v10  ;;  %v1490_v8 = vld [vmem:[%s1781_s1 + $0x20] sm:$0xff] }
0x12fa   :  { %vm791_vm9 = vmor %vm789_vm8, %vm790_vm7 }
0x12fb   :  { %v786_v13 = vsub.f32 1.0, %v785_v12 }
0x12fd   :  { %v787_v14 = vmul.f32 %v1445_v10, %v786_v13 }
0x12ff   :  { %v788_v15 = vadd.f32 %v1445_v10, %v787_v14 }
0x1301   :  { %v792_v18 = vsel %vm791_vm9, %v1445_v10, %v788_v15  ;;  %v1491_v10 = vld [vmem:[%s1781_s1 + $0x18] sm:$0xff] }
0x1302   :  { %v797_v22 = vsel %vm794_vm10, %v796_v19, %v792_v18 }
0x1303   :  { %v810_v27 = vsub.f32 1.0, %v797_v22  ;;  %v816_v29 = vmul.f32 %v797_v22, %v758_v59 }
0x133f   :  { %v801_v21 = vpop.permute.xlu2 %800 }
0x1340   :  { %v803_v23 = vmul.f32 %v801_v21, %v797_v22 }
0x1342   :  { %805 = vrot.lane.b32.xlu0 %v803_v23, %s1496_s28 }
0x13b4   :  { %v806_v24 = vpop.permute.xlu0 %805 }
0x13b5   :  { %v808_v25 = vadd.f32 %v806_v24, %v259_v3  ;;  %v155_v3 = vadd.f32 %v1554_v9, %v154_v0  ;;  %v1701_v9 = vld [vmem:[%s1783_s2 + $0x2] ss:$0 sm:$0xff] }
0x13b7   :  { %1446 = vtanh.f32 %v808_v25  ;;  %v178_v5 = vmax.f32 %v155_v3, 0.0  ;;  %v157_v3 = vpop.f32.mrf.mxu0 }
0x13b9   :  { %v188_v6 = vpack.c.bf16 %v178_v5, %v177_v2  ;;  %v1727_v5 = vld [vmem:[%s1783_s2] ss:$0 sm:$0xff] }
0x13bb   :  { %1322 = vmatmul.msk.bf16.gmra.mxu1 %vm204_vm2, %v188_v6  ;;  %v158_v6 = vadd.f32 %v1727_v5, %v157_v3 }
0x13bd   :  { %v1447_v26 = vpop.eup %1446 }
0x13be   :  { %812 = vrot.lane.b32.xlu1 %v1447_v26, %s1497_s4 }
0x1430   :  { %v813_v28 = vpop.permute.xlu1 %812 }
0x1431   :  { %v815_v30 = vmul.f32 %v813_v28, %v810_v27 }
0x1433   :  { %v817_v31 = vadd.f32 %v816_v29, %v815_v30 }
0x1435   :  { %v818_v32 = vpack.c.bf16 %v817_v31, %v817_v31 }
0x1437   :  { %820 = vrot.lane.b32.xlu2 %v818_v32, %s1497_s4 }
0x1438   :  { %v263_v15 = vpop.f32.mrf.mxu1 }
0x1439   :  { %v264_v16 = vadd.f32 %v1569_v20, %v263_v15 }
0x1491   :  { %v821_v33 = vpop.permute.xlu2 %820 }
0x1492   :  { %1350 = vmatmul.msk.bf16.vlgmr.msra.gmra.mxu3 %vm204_vm2, %v821_v33 }
0x1493   :  { %1067 = vmatpush.bf16.msra.mxu3 %v1524_v1 }
0x1497   :  { %1068 = vmatpush.bf16.msra.mxu3 %v1532_v4 }
0x1515   :  { %v834_v34 = vpop.f32.mrf.mxu3 }
0x1516   :  { %v835_v35 = vadd.f32 %v1560_v11, %v834_v34 }
0x1518   :  { %859 = vrot.lane.b32.xlu0 %v835_v35, %s1496_s28  ;;  %v838_v39 = vadd.f32 %v835_v35, %v261_v38 }
0x151a   :  { %v1351_v40 = vmul.f32 -1.442695, %v838_v39 }
0x151c   :  { %1448 = vpow2.f32 %v1351_v40 }
0x151d   :  { %v836_v36 = vpop.f32.mrf.mxu3 }
0x1522   :  { %v1449_v41 = vpop.eup %1448 }
0x1523   :  { %v842_v42 = vadd.f32 1.0, %v1449_v41 }
0x1525   :  { %1450 = vrcp.f32 %v842_v42  ;;  %v854_v46 = vand.u32 2147483648, %v842_v42  ;;  %vm848_vm12 = vweird.f32 %v842_v42  ;;  %v852_v11 = vand.u32 2147483647, %v842_v42 }
0x1527   :  { %v855_v48 = vor.u32 1.1754944e-38, %v854_v46  ;;  %vm853_vm14 = vcmp.eq.f32.partialorder %v852_v11, 8.507059e+37 }
0x152b   :  { %v1451_v43 = vpop.eup %1450 }
0x152c   :  { %v844_v44 = vmul.f32 %v1451_v43, %v842_v42  ;;  %vm849_vm11 = vweird.f32 %v1451_v43 }
0x152d   :  { %vm850_vm13 = vmor %vm848_vm12, %vm849_vm11 }
0x152e   :  { %v845_v1 = vsub.f32 1.0, %v844_v44 }
0x1530   :  { %v846_v45 = vmul.f32 %v1451_v43, %v845_v1 }
0x1532   :  { %v847_v4 = vadd.f32 %v1451_v43, %v846_v45  ;;  %v265_v45 = vpop.f32.mrf.mxu1 }
0x1534   :  { %v851_v47 = vsel %vm850_vm13, %v1451_v43, %v847_v4  ;;  %v1715_v4 = vld [vmem:[%s1783_s2 + $0x1] ss:$0 sm:$0xff] }
0x1535   :  { %v856_v50 = vsel %vm853_vm14, %v855_v48, %v851_v47  ;;  %v266_v46 = vadd.f32 %v1715_v4, %v265_v45 }
0x1536   :  { %v869_v56 = vsub.f32 1.0, %v856_v50  ;;  %v875_v58 = vmul.f32 %v856_v50, %v817_v31 }
0x158a   :  { %v860_v49 = vpop.permute.xlu0 %859 }
0x158b   :  { %v862_v51 = vmul.f32 %v860_v49, %v856_v50 }
0x158d   :  { %864 = vrot.lane.b32.xlu1 %v862_v51, %s1496_s28 }
0x15ff   :  { %v865_v53 = vpop.permute.xlu1 %864 }
0x1600   :  { %v867_v54 = vadd.f32 %v865_v53, %v261_v38 }
0x1602   :  { %1452 = vtanh.f32 %v867_v54 }
0x1608   :  { %v1453_v55 = vpop.eup %1452 }
0x1609   :  { %871 = vrot.lane.b32.xlu2 %v1453_v55, %s1497_s4 }
0x1663   :  { %v872_v57 = vpop.permute.xlu2 %871 }
0x1664   :  { %v874_v59 = vmul.f32 %v872_v57, %v869_v56 }
0x1666   :  { %v876_v60 = vadd.f32 %v875_v58, %v874_v59 }
0x1668   :  { %v877_v61 = vpack.c.bf16 %v876_v60, %v876_v60 }
0x166a   :  { %879 = vrot.lane.b32.xlu0 %v877_v61, %s1497_s4 }
0x16dc   :  { %v880_v7 = vpop.permute.xlu0 %879 }
0x16dd   :  { %1352 = vmatmul.msk.bf16.vlgmr.msrb.gmra.mxu2 %vm204_vm2, %v880_v7  ;;  %v159_v7 = vpop.f32.mrf.mxu0 }
0x16de   :  { %1126 = vmatpush.bf16.msrb.mxu2 %v1490_v8 }
0x16e2   :  { %1127 = vmatpush.bf16.msrb.mxu2 %v1491_v10 }
0x1760   :  { %v893_v12 = vpop.f32.mrf.mxu2 }
0x1761   :  { %v894_v13 = vadd.f32 %v1701_v9, %v893_v12 }
0x1763   :  { %918 = vrot.lane.b32.xlu1 %v894_v13, %s1496_s28  ;;  %v897_v17 = vadd.f32 %v894_v13, %v264_v16 }
0x1765   :  { %v1353_v18 = vmul.f32 -1.442695, %v897_v17 }
0x1767   :  { %1454 = vpow2.f32 %v1353_v18 }
0x1768   :  { %v895_v14 = vpop.f32.mrf.mxu2 }
0x176d   :  { %v1455_v19 = vpop.eup %1454 }
0x176e   :  { %v901_v21 = vadd.f32 1.0, %v1455_v19 }
0x1770   :  { %1456 = vrcp.f32 %v901_v21  ;;  %v913_v27 = vand.u32 2147483648, %v901_v21  ;;  %vm907_vm0 = vweird.f32 %v901_v21  ;;  %v911_v28 = vand.u32 2147483647, %v901_v21 }
0x1772   :  { %v914_v30 = vor.u32 1.1754944e-38, %v913_v27  ;;  %vm912_vm4 = vcmp.eq.f32.partialorder %v911_v28, 8.507059e+37 }
0x1776   :  { %v1457_v22 = vpop.eup %1456 }
0x1777   :  { %v903_v23 = vmul.f32 %v1457_v22, %v901_v21  ;;  %vm908_vm15 = vweird.f32 %v1457_v22 }
0x1778   :  { %vm909_vm3 = vmor %vm907_vm0, %vm908_vm15 }
0x1779   :  { %v904_v24 = vsub.f32 1.0, %v903_v23 }
0x177b   :  { %v905_v25 = vmul.f32 %v1457_v22, %v904_v24 }
0x177d   :  { %v906_v26 = vadd.f32 %v1457_v22, %v905_v25 }
0x177f   :  { %v910_v29 = vsel %vm909_vm3, %v1457_v22, %v906_v26 }
0x1780   :  { %v915_v31 = vsel %vm912_vm4, %v914_v30, %v910_v29 }
0x1781   :  { %v928_v36 = vsub.f32 1.0, %v915_v31  ;;  %v934_v38 = vmul.f32 %v915_v31, %v876_v60 }
0x17d5   :  { %v919_v20 = vpop.permute.xlu1 %918 }
0x17d6   :  { %v921_v32 = vmul.f32 %v919_v20, %v915_v31 }
0x17d8   :  { %923 = vrot.lane.b32.xlu2 %v921_v32, %s1496_s28 }
0x1832   :  { %v924_v33 = vpop.permute.xlu2 %923 }
0x1833   :  { %v926_v34 = vadd.f32 %v924_v33, %v264_v16 }
0x1835   :  { %1458 = vtanh.f32 %v926_v34 }
0x183b   :  { %v1459_v35 = vpop.eup %1458 }
0x183c   :  { %930 = vrot.lane.b32.xlu0 %v1459_v35, %s1497_s4 }
0x18ae   :  { %v931_v37 = vpop.permute.xlu0 %930 }
0x18af   :  { %v933_v39 = vmul.f32 %v931_v37, %v928_v36 }
0x18b1   :  { %v935_v40 = vadd.f32 %v934_v38, %v933_v39 }
0x18b3   :  { %v936_v41 = vpack.c.bf16 %v935_v40, %v935_v40 }
0x18b5   :  { %938 = vrot.lane.b32.xlu1 %v936_v41, %s1497_s4 }
0x1927   :  { %v939_v42 = vpop.permute.xlu1 %938 }
0x1928   :  { %1354 = vmatmul.msk.bf16.vlgmr.msrb.gmra.mxu3 %vm204_vm2, %v939_v42 }
0x1929   :  { %1185 = vmatpush.bf16.msrb.mxu3 %v1490_v8  ;;  %v179_v8 = vmax.f32 %v158_v6, 0.0 }
0x192d   :  { %1186 = vmatpush.bf16.msrb.mxu3 %v1491_v10  ;;  %v160_v10 = vadd.f32 %v1727_v5, %v159_v7 }
0x192f   :  { %v180_v12 = vmax.f32 %v160_v10, 0.0 }
0x1931   :  { %v189_v13 = vpack.c.bf16 %v180_v12, %v179_v8  ;;  %v1386_v12 = vld [vmem:[%s1782_s0 + $0x38] sm:$0xff] }
0x1932   :  { %1308 = vmatmul.msk.bf16.gmra.mxu0 %vm89_vm1, %v1386_v12 }
0x1933   :  { %1323 = vmatmul.msk.bf16.gmra.mxu1 %vm204_vm2, %v189_v13 }
0x19ab   :  { %v952_v43 = vpop.f32.mrf.mxu3 }
0x19ac   :  { %v953_v44 = vadd.f32 %v1701_v9, %v952_v43 }
0x19ae   :  { %977 = vrot.lane.b32.xlu2 %v953_v44, %s1496_s28  ;;  %v956_v11 = vadd.f32 %v953_v44, %v266_v46 }
0x19b0   :  { %v1355_v47 = vmul.f32 -1.442695, %v956_v11  ;;  %v268_v25 = vpop.f32.mrf.mxu1 }
0x19b1   :  { %v269_v26 = vadd.f32 %v1715_v4, %v268_v25 }
0x19b2   :  { %1460 = vpow2.f32 %v1355_v47 }
0x19b3   :  { %v954_v1 = vpop.f32.mrf.mxu3 }
0x19b8   :  { %v1461_v48 = vpop.eup %1460 }
0x19b9   :  { %v960_v49 = vadd.f32 1.0, %v1461_v48 }
0x19bb   :  { %1462 = vrcp.f32 %v960_v49  ;;  %v972_v55 = vand.u32 2147483648, %v960_v49  ;;  %vm966_vm6 = vweird.f32 %v960_v49  ;;  %v970_v56 = vand.u32 2147483647, %v960_v49 }
0x19bd   :  { %v973_v58 = vor.u32 1.1754944e-38, %v972_v55  ;;  %vm971_vm8 = vcmp.eq.f32.partialorder %v970_v56, 8.507059e+37 }
0x19c1   :  { %v1463_v50 = vpop.eup %1462 }
0x19c2   :  { %v962_v51 = vmul.f32 %v1463_v50, %v960_v49  ;;  %vm967_vm5 = vweird.f32 %v1463_v50 }
0x19c3   :  { %vm968_vm7 = vmor %vm966_vm6, %vm967_vm5 }
0x19c4   :  { %v963_v52 = vsub.f32 1.0, %v962_v51 }
0x19c6   :  { %v964_v53 = vmul.f32 %v1463_v50, %v963_v52 }
0x19c8   :  { %v965_v54 = vadd.f32 %v1463_v50, %v964_v53  ;;  %v270_v53 = vpop.f32.mrf.mxu1 }
0x19ca   :  { %v969_v57 = vsel %vm968_vm7, %v1463_v50, %v965_v54  ;;  %v271_v54 = vadd.f32 %v1715_v4, %v270_v53 }
0x19cb   :  { %v974_v60 = vsel %vm971_vm8, %v973_v58, %v969_v57 }
0x19cc   :  { %v987_v14 = vsub.f32 1.0, %v974_v60  ;;  %v993_v16 = vmul.f32 %v974_v60, %v935_v40 }
0x1a08   :  { %v978_v59 = vpop.permute.xlu2 %977 }
0x1a09   :  { %v980_v61 = vmul.f32 %v978_v59, %v974_v60 }
0x1a0b   :  { %982 = vrot.lane.b32.xlu0 %v980_v61, %s1496_s28 }
0x1a7d   :  { %v983_v63 = vpop.permute.xlu0 %982 }
0x1a7e   :  { %v985_v0 = vadd.f32 %v983_v63, %v266_v46 }
0x1a80   :  { %1464 = vtanh.f32 %v985_v0 }
0x1a86   :  { %v1465_v2 = vpop.eup %1464 }
0x1a87   :  { %989 = vrot.lane.b32.xlu1 %v1465_v2, %s1497_s4 }
0x1af9   :  { %v990_v15 = vpop.permute.xlu1 %989 }
0x1afa   :  { %v992_v17 = vmul.f32 %v990_v15, %v987_v14 }
0x1afc   :  { %v994_v18 = vadd.f32 %v993_v16, %v992_v17  ;;  %v162_v16 = vpop.f32.mrf.mxu0 }
0x1afd   :  { %v163_v17 = vadd.f32 %v1727_v5, %v162_v16 }
0x1afe   :  { %v995_v19 = vpack.c.bf16 %v994_v18, %v994_v18 }
0x1b00   :  { %997 = vrot.lane.b32.xlu2 %v995_v19, %s1497_s4  ;;  %v181_v19 = vmax.f32 %v163_v17, 0.0 }
0x1b5a   :  { %v998_v21 = vpop.permute.xlu2 %997 }
0x1b5b   :  { %1356 = vmatmul.msk.bf16.vlgmr.msra.gmra.mxu2 %vm204_vm2, %v998_v21 }
0x1bde   :  { %v1011_v22 = vpop.f32.mrf.mxu2 }
0x1bdf   :  { %v1012_v23 = vadd.f32 %v1701_v9, %v1011_v22 }
0x1be1   :  { %1036 = vrot.lane.b32.xlu0 %v1012_v23, %s1496_s28  ;;  %v1015_v27 = vadd.f32 %v1012_v23, %v269_v26 }
0x1be3   :  { %v1357_v28 = vmul.f32 -1.442695, %v1015_v27 }
0x1be5   :  { %1466 = vpow2.f32 %v1357_v28 }
0x1be6   :  { %v1013_v24 = vpop.f32.mrf.mxu2 }
0x1beb   :  { %v1467_v29 = vpop.eup %1466 }
0x1bec   :  { %v1019_v30 = vadd.f32 1.0, %v1467_v29 }
0x1bee   :  { %1468 = vrcp.f32 %v1019_v30  ;;  %v1031_v35 = vand.u32 2147483648, %v1019_v30  ;;  %vm1025_vm10 = vweird.f32 %v1019_v30  ;;  %v1029_v36 = vand.u32 2147483647, %v1019_v30 }
0x1bf0   :  { %v1032_v38 = vor.u32 1.1754944e-38, %v1031_v35  ;;  %vm1030_vm12 = vcmp.eq.f32.partialorder %v1029_v36, 8.507059e+37 }
0x1bf4   :  { %v1469_v20 = vpop.eup %1468 }
0x1bf5   :  { %v1021_v31 = vmul.f32 %v1469_v20, %v1019_v30  ;;  %vm1026_vm9 = vweird.f32 %v1469_v20 }
0x1bf6   :  { %vm1027_vm11 = vmor %vm1025_vm10, %vm1026_vm9 }
0x1bf7   :  { %v1022_v32 = vsub.f32 1.0, %v1021_v31 }
0x1bf9   :  { %v1023_v33 = vmul.f32 %v1469_v20, %v1022_v32 }
0x1bfb   :  { %v1024_v34 = vadd.f32 %v1469_v20, %v1023_v33 }
0x1bfd   :  { %v1028_v37 = vsel %vm1027_vm11, %v1469_v20, %v1024_v34 }
0x1bfe   :  { %v1033_v40 = vsel %vm1030_vm12, %v1032_v38, %v1028_v37 }
0x1bff   :  { %v1046_v1 = vsub.f32 1.0, %v1033_v40  ;;  %v1052_v46 = vmul.f32 %v1033_v40, %v994_v18  ;;  %v164_v18 = vpop.f32.mrf.mxu0 }
0x1c00   :  { %v165_v21 = vadd.f32 %v1727_v5, %v164_v18  ;;  %v1378_v18 = vld [vmem:[%s1781_s1 + $0x30] sm:$0xff] }
0x1c01   :  { %1257 = vmatpush.bf16.msrb.mxu0 %v1378_v18 }
0x1c02   :  { %v182_v22 = vmax.f32 %v165_v21, 0.0 }
0x1c04   :  { %v190_v23 = vpack.c.bf16 %v182_v22, %v181_v19 }
0x1c06   :  { %1324 = vmatmul.msk.bf16.gmra.mxu1 %vm204_vm2, %v190_v23  ;;  %v1377_v23 = vld [vmem:[%s1781_s1 + $0x28] sm:$0xff] }
0x1c07   :  { %1258 = vmatpush.bf16.msrb.mxu0 %v1377_v23 }
0x1c53   :  { %v1037_v39 = vpop.permute.xlu0 %1036 }
0x1c54   :  { %v1039_v41 = vmul.f32 %v1037_v39, %v1033_v40 }
0x1c56   :  { %1041 = vrot.lane.b32.xlu1 %v1039_v41, %s1496_s28 }
0x1c83   :  { %v273_v32 = vpop.f32.mrf.mxu1 }
0x1c84   :  { %v274_v33 = vadd.f32 %v1715_v4, %v273_v32 }
0x1cc8   :  { %v1042_v42 = vpop.permute.xlu1 %1041 }
0x1cc9   :  { %v1044_v43 = vadd.f32 %v1042_v42, %v269_v26 }
0x1ccb   :  { %1470 = vtanh.f32 %v1044_v43 }
0x1cd1   :  { %v1471_v44 = vpop.eup %1470 }
0x1cd2   :  { %1048 = vrot.lane.b32.xlu2 %v1471_v44, %s1497_s4 }
0x1d2c   :  { %v1049_v45 = vpop.permute.xlu2 %1048 }
0x1d2d   :  { %v1051_v11 = vmul.f32 %v1049_v45, %v1046_v1 }
0x1d2f   :  { %v1053_v47 = vadd.f32 %v1052_v46, %v1051_v11 }
0x1d31   :  { %v1054_v48 = vpack.c.bf16 %v1053_v47, %v1053_v47 }
0x1d33   :  { %1056 = vrot.lane.b32.xlu0 %v1054_v48, %s1497_s4 }
0x1da5   :  { %v1057_v49 = vpop.permute.xlu0 %1056 }
0x1da6   :  { %1358 = vmatmul.msk.bf16.vlgmr.msra.gmra.mxu3 %vm204_vm2, %v1057_v49 }
0x1e29   :  { %v1070_v50 = vpop.f32.mrf.mxu3 }
0x1e2a   :  { %v1071_v51 = vadd.f32 %v1701_v9, %v1070_v50 }
0x1e2c   :  { %1095 = vrot.lane.b32.xlu1 %v1071_v51, %s1496_s28  ;;  %v1074_v55 = vadd.f32 %v1071_v51, %v271_v54 }
0x1e2e   :  { %v1359_v56 = vmul.f32 -1.442695, %v1074_v55 }
0x1e30   :  { %1472 = vpow2.f32 %v1359_v56 }
0x1e31   :  { %v1072_v52 = vpop.f32.mrf.mxu3 }
0x1e36   :  { %v1473_v57 = vpop.eup %1472 }
0x1e37   :  { %v1078_v58 = vadd.f32 1.0, %v1473_v57 }
0x1e39   :  { %1474 = vrcp.f32 %v1078_v58  ;;  %v1090_v0 = vand.u32 2147483648, %v1078_v58  ;;  %vm1084_vm14 = vweird.f32 %v1078_v58  ;;  %v1088_v2 = vand.u32 2147483647, %v1078_v58 }
0x1e3b   :  { %v1091_v6 = vor.u32 1.1754944e-38, %v1090_v0  ;;  %vm1089_vm0 = vcmp.eq.f32.partialorder %v1088_v2, 8.507059e+37 }
0x1e3f   :  { %v1475_v59 = vpop.eup %1474 }
0x1e40   :  { %v1080_v60 = vmul.f32 %v1475_v59, %v1078_v58  ;;  %vm1085_vm13 = vweird.f32 %v1475_v59 }
0x1e41   :  { %vm1086_vm15 = vmor %vm1084_vm14, %vm1085_vm13 }
0x1e42   :  { %v1081_v61 = vsub.f32 1.0, %v1080_v60 }
0x1e44   :  { %v1082_v62 = vmul.f32 %v1475_v59, %v1081_v61  ;;  %v275_v61 = vpop.f32.mrf.mxu1 }
0x1e46   :  { %v1083_v63 = vadd.f32 %v1475_v59, %v1082_v62  ;;  %v276_v62 = vadd.f32 %v1715_v4, %v275_v61 }
0x1e48   :  { %v1087_v3 = vsel %vm1086_vm15, %v1475_v59, %v1083_v63 }
0x1e49   :  { %v1092_v8 = vsel %vm1089_vm0, %v1091_v6, %v1087_v3 }
0x1e4a   :  { %v1105_v24 = vsub.f32 1.0, %v1092_v8  ;;  %v1111_v26 = vmul.f32 %v1092_v8, %v1053_v47 }
0x1e9e   :  { %v1096_v7 = vpop.permute.xlu1 %1095 }
0x1e9f   :  { %v1098_v10 = vmul.f32 %v1096_v7, %v1092_v8 }
0x1ea1   :  { %1100 = vrot.lane.b32.xlu2 %v1098_v10, %s1496_s28 }
0x1efb   :  { %v1101_v13 = vpop.permute.xlu2 %1100 }
0x1efc   :  { %v1103_v14 = vadd.f32 %v1101_v13, %v271_v54 }
0x1efe   :  { %1476 = vtanh.f32 %v1103_v14 }
0x1f04   :  { %v1477_v15 = vpop.eup %1476 }
0x1f05   :  { %1107 = vrot.lane.b32.xlu0 %v1477_v15, %s1497_s4 }
0x1f77   :  { %v1108_v25 = vpop.permute.xlu0 %1107 }
0x1f78   :  { %v1110_v27 = vmul.f32 %v1108_v25, %v1105_v24 }
0x1f7a   :  { %v1112_v28 = vadd.f32 %v1111_v26, %v1110_v27 }
0x1f7c   :  { %v1113_v29 = vpack.c.bf16 %v1112_v28, %v1112_v28 }
0x1f7e   :  { %1115 = vrot.lane.b32.xlu1 %v1113_v29, %s1497_s4 }
0x1ff0   :  { %v1116_v30 = vpop.permute.xlu1 %1115 }
0x1ff1   :  { %1360 = vmatmul.msk.bf16.vlgmr.msrb.gmra.mxu2 %vm204_vm2, %v1116_v30 }
0x2074   :  { %v1129_v20 = vpop.f32.mrf.mxu2 }
0x2075   :  { %v1130_v31 = vadd.f32 %v1701_v9, %v1129_v20  ;;  %v1393_v20 = vld [vmem:[%s1783_s2 + $0x3] ss:$0 sm:$0xff] }
0x2077   :  { %1154 = vrot.lane.b32.xlu2 %v1130_v31, %s1496_s28  ;;  %v1133_v34 = vadd.f32 %v1130_v31, %v274_v33 }
0x2079   :  { %v1361_v35 = vmul.f32 -1.442695, %v1133_v34 }
0x207b   :  { %1478 = vpow2.f32 %v1361_v35 }
0x207c   :  { %v1131_v5 = vpop.f32.mrf.mxu2 }
0x2081   :  { %v1479_v36 = vpop.eup %1478 }
0x2082   :  { %v1137_v37 = vadd.f32 1.0, %v1479_v36 }
0x2084   :  { %1480 = vrcp.f32 %v1137_v37  ;;  %v1149_v43 = vand.u32 2147483648, %v1137_v37  ;;  %vm1143_vm3 = vweird.f32 %v1137_v37  ;;  %v1147_v44 = vand.u32 2147483647, %v1137_v37 }
0x2086   :  { %v1150_v45 = vor.u32 1.1754944e-38, %v1149_v43  ;;  %vm1148_vm5 = vcmp.eq.f32.partialorder %v1147_v44, 8.507059e+37 }
0x208a   :  { %v1481_v38 = vpop.eup %1480 }
0x208b   :  { %v1139_v39 = vmul.f32 %v1481_v38, %v1137_v37  ;;  %vm1144_vm1 = vweird.f32 %v1481_v38 }
0x208c   :  { %vm1145_vm4 = vmor %vm1143_vm3, %vm1144_vm1 }
0x208d   :  { %v1140_v40 = vsub.f32 1.0, %v1139_v39 }
0x208f   :  { %v1141_v41 = vmul.f32 %v1481_v38, %v1140_v40 }
0x2091   :  { %v1142_v42 = vadd.f32 %v1481_v38, %v1141_v41 }
0x2093   :  { %v1146_v1 = vsel %vm1145_vm4, %v1481_v38, %v1142_v42 }
0x2094   :  { %v1151_v11 = vsel %vm1148_vm5, %v1150_v45, %v1146_v1 }
0x2095   :  { %v1164_v51 = vsub.f32 1.0, %v1151_v11  ;;  %v1170_v53 = vmul.f32 %v1151_v11, %v1112_v28 }
0x20d1   :  { %v1155_v46 = vpop.permute.xlu2 %1154 }
0x20d2   :  { %v1157_v47 = vmul.f32 %v1155_v46, %v1151_v11 }
0x20d4   :  { %1159 = vrot.lane.b32.xlu0 %v1157_v47, %s1496_s28 }
0x2146   :  { %v1160_v48 = vpop.permute.xlu0 %1159 }
0x2147   :  { %v1162_v49 = vadd.f32 %v1160_v48, %v274_v33 }
0x2149   :  { %1482 = vtanh.f32 %v1162_v49 }
0x214f   :  { %v1483_v50 = vpop.eup %1482 }
0x2150   :  { %1166 = vrot.lane.b32.xlu1 %v1483_v50, %s1497_s4 }
0x21c2   :  { %v1167_v52 = vpop.permute.xlu1 %1166 }
0x21c3   :  { %v1169_v54 = vmul.f32 %v1167_v52, %v1164_v51 }
0x21c5   :  { %v1171_v55 = vadd.f32 %v1170_v53, %v1169_v54 }
0x21c7   :  { %v1172_v56 = vpack.c.bf16 %v1171_v55, %v1171_v55 }
0x21c9   :  { %1174 = vrot.lane.b32.xlu2 %v1172_v56, %s1497_s4 }
0x2223   :  { %v1175_v57 = vpop.permute.xlu2 %1174 }
0x2224   :  { %1362 = vmatmul.msk.bf16.vlgmr.msrb.gmra.mxu3 %vm204_vm2, %v1175_v57 }
0x22a7   :  { %v1188_v58 = vpop.f32.mrf.mxu3 }
0x22a8   :  { %v1189_v59 = vadd.f32 %v1701_v9, %v1188_v58 }
0x22aa   :  { %1213 = vrot.lane.b32.xlu0 %v1189_v59, %s1496_s28  ;;  %v1192_v63 = vadd.f32 %v1189_v59, %v276_v62 }
0x22ac   :  { %v1363_v0 = vmul.f32 -1.442695, %v1192_v63 }
0x22ae   :  { %1484 = vpow2.f32 %v1363_v0 }
0x22af   :  { %v1190_v60 = vpop.f32.mrf.mxu3 }
0x22b4   :  { %v1485_v2 = vpop.eup %1484 }
0x22b5   :  { %v1196_v3 = vadd.f32 1.0, %v1485_v2 }
0x22b7   :  { %1486 = vrcp.f32 %v1196_v3  ;;  %v1208_v13 = vand.u32 2147483648, %v1196_v3  ;;  %vm1202_vm7 = vweird.f32 %v1196_v3  ;;  %v1206_v9 = vand.u32 2147483647, %v1196_v3 }
0x22b9   :  { %v1209_v15 = vor.u32 1.1754944e-38, %v1208_v13  ;;  %vm1207_vm9 = vcmp.eq.f32.partialorder %v1206_v9, 8.507059e+37 }
0x22bd   :  { %v1487_v6 = vpop.eup %1486 }
0x22be   :  { %v1198_v7 = vmul.f32 %v1487_v6, %v1196_v3  ;;  %vm1203_vm6 = vweird.f32 %v1487_v6 }
0x22bf   :  { %vm1204_vm8 = vmor %vm1202_vm7, %vm1203_vm6 }
0x22c0   :  { %v1199_v8 = vsub.f32 1.0, %v1198_v7 }
0x22c2   :  { %v1200_v10 = vmul.f32 %v1487_v6, %v1199_v8 }
0x22c4   :  { %v1201_v12 = vadd.f32 %v1487_v6, %v1200_v10 }
0x22c6   :  { %v1205_v14 = vsel %vm1204_vm8, %v1487_v6, %v1201_v12 }
0x22c7   :  { %v1210_v16 = vsel %vm1207_vm9, %v1209_v15, %v1205_v14 }
0x22c8   :  { %v1223_v24 = vsub.f32 1.0, %v1210_v16  ;;  %v1229_v26 = vmul.f32 %v1210_v16, %v1171_v55 }
0x231c   :  { %v1214_v4 = vpop.permute.xlu0 %1213 }
0x231d   :  { %v1216_v17 = vmul.f32 %v1214_v4, %v1210_v16 }
0x231f   :  { %1218 = vrot.lane.b32.xlu1 %v1216_v17, %s1496_s28 }
0x2391   :  { %v1219_v19 = vpop.permute.xlu1 %1218 }
0x2392   :  { %v1221_v21 = vadd.f32 %v1219_v19, %v276_v62 }
0x2394   :  { %1488 = vtanh.f32 %v1221_v21 }
0x239a   :  { %v1489_v22 = vpop.eup %1488 }
0x239b   :  { %1225 = vrot.lane.b32.xlu2 %v1489_v22, %s1497_s4 }
0x23f5   :  { %v1226_v25 = vpop.permute.xlu2 %1225 }
0x23f6   :  { %v1228_v27 = vmul.f32 %v1226_v25, %v1223_v24 }
0x23f8   :  { %v1230_v28 = vadd.f32 %v1229_v26, %v1228_v27 }
0x23fa   :  { %v1231_v29 = vpack.c.bf16 %v1230_v28, %v1230_v28 }
0x23fc   :  { %1234 = vrot.lane.b32.xlu0 %v1231_v29, %s1497_s4 }
0x246e   :  { %v1235_v30 = vpop.permute.xlu0 %1234 }
0x246f   :  { %1372 = vmatmul.msk.bf16.vlgmr.msrb.gmra.mxu0 %vm204_vm2, %v1235_v30 }
0x24ec   :  { %v1260_v31 = vpop.f32.mrf.mxu0 }
0x24ed   :  { %v1261_v5 = vadd.f32 %v1393_v20, %v1260_v31 }
0x24ef   :  { %1264 = vst [vmem:[%s1784_s3] sm:$0xff] %v1261_v5 }
0x24f4   :  { %v1262_v32 = vpop.f32.mrf.mxu0 }

</bundles_post_ra>
